<compile_context>
chip_gen: v5e
topology: v5e:2x2
jax: 0.10.0
libtpu: 0.0.40
codegen_flags: <defaults>
</compile_context>

<pallas_src>
import functools

import jax
import jax.numpy as jnp
from jax.experimental import pallas as pl
from jax.experimental.pallas import tpu as pltpu


# ----------------------------------------------------------------------------- kernel
def _mask_stats_kernel(pred_ref, tgt_ref, lm_ref, out_ref, *,
                       top_k, num_rows, tile_rows, tiles_per_split, unroll_topk):
    """Accumulate per-tile partial sums into an (L, 8, 128) accumulator (per split).

    Output lanes (broadcast across the 8 sublanes), per layer:
      0: sum of per-row dice losses
      1: sum of top-k masked-BCE values
      2: count of (pred > 0) among the top-k selected elements   (final layer only)
      3: count of (tgt  > 0) among the top-k selected elements   (final layer only)
      4: count of ((pred>0)|(tgt>0)) among the top-k selection    (final layer only)
      5: count of (pred > 0) over all valid elements              (final layer only)
      6: count of (tgt  > 0) over all valid elements              (final layer only)
    """
    s = pl.program_id(0)          # row-range split (parallel -> megacore on v7x)
    i = pl.program_id(1)          # row tile within the split (sequential reduction)

    @pl.when(i == 0)
    def _():
        out_ref[...] = jnp.zeros_like(out_ref)

    num_layers, tm, n = pred_ref.shape

    # ---------------- per-tile, layer-invariant work ----------------
    t = tgt_ref[...].astype(jnp.float32)       # (TM, N) binary targets
    lm = lm_ref[...].astype(jnp.float32)       # (TM, N) BCE loss mask

    tile_idx = s * tiles_per_split + i         # un-clamped global row-tile index
    row = jax.lax.broadcasted_iota(jnp.int32, (tm, 1), 0)
    valid = (tile_idx * tile_rows + row) < num_rows   # (TM,1); False on pad/dup tiles

    # MXU helper for exact 0/1 counts: the RHS selects only column 0, so the (TM,128)
    # product holds the per-row count in lane 0 and exact zeros elsewhere; a masked
    # full sum of it is exact (0/1 products + f32 MXU accumulation are exact even if
    # the compiler uses a bf16 pass decomposition).  Keeps these reductions off the
    # VALU/XLU slots that the top-k loop saturates.
    col0_rhs = (jax.lax.broadcasted_iota(jnp.int32, (n, 128), 1) == 0).astype(jnp.float32)

    def mxu_count(ind):
        rows = jnp.dot(ind.astype(jnp.float32), col0_rhs,
                       preferred_element_type=jnp.float32)          # (TM, 128)
        return jnp.sum(jnp.where(valid, rows, 0.0))

    sum_t_row = jnp.sum(t, axis=-1, keepdims=True)   # dice denominator term (shared)
    gt_pos = t > 0.0
    gt_cnt = mxu_count(gt_pos)                       # num_gt_placements partial (shared)

    lane = jax.lax.broadcasted_iota(jnp.int32, (8, 128), 1)

    def dice_and_bce(x):
        # one exp() feeds both the sigmoid and the stable-BCE tail (EUP single-issue).
        e = jnp.exp(-jnp.abs(x))
        inv = 1.0 / (1.0 + e)
        p = jnp.where(x >= 0.0, inv, 1.0 - inv)      # sigmoid(x)
        bce = (jnp.maximum(x, 0.0) - x * t + jnp.log1p(e)) * lm
        # value sums stay on the XLU: exact f32 accumulation (an MXU dot at default
        # precision would round the operands to bf16 and miss the test tolerance).
        sum_p = jnp.sum(p, axis=-1, keepdims=True)
        sum_pt = jnp.sum(p * t, axis=-1, keepdims=True)
        dice_row = 1.0 - (2.0 * sum_pt + 1.0) / (sum_p + sum_t_row + 1.0)
        return jnp.sum(jnp.where(valid, dice_row, 0.0)), bce

    def topk_sum(bce, sel_mask):
        r = jnp.sum(jnp.where(sel_mask, bce, 0.0), axis=-1, keepdims=True)
        return jnp.sum(jnp.where(valid, r, 0.0))

    # ---------------- auxiliary (deep-supervision) layers ----------------
    # Only the (tie / ULP-reorder insensitive) dice and top-k BCE loss sums are needed
    # here, so the top-k loop runs on packed int32 keys: high bits = BCE value bits
    # (BCE >= 0, so the f32->i32 bitcast is order-preserving), low ceil(log2 N) bits =
    # descending column index (lowest column wins ties).  ONE cross-lane reduce per
    # iteration; the killed entries ARE the selection mask, so there is no mask carry.
    nbits = max(1, (n - 1).bit_length())
    hi_mask = jnp.int32(~((1 << nbits) - 1))
    idx_desc = (n - 1) - jax.lax.broadcasted_iota(jnp.int32, (1, n), 1)
    kill_key = jnp.int32(-(2 ** 31))

    def aux_body(l, carry):
        x = pred_ref[l].astype(jnp.float32)
        dice_sum, bce = dice_and_bce(x)
        keys = (pltpu.bitcast(bce, jnp.int32) & hi_mask) | idx_desc

        def body(_, work):
            mkey = jnp.max(work, axis=-1, keepdims=True)
            return jnp.where(work == mkey, kill_key, work)

        work = jax.lax.fori_loop(0, top_k, body, keys, unroll=unroll_topk)
        sel_mask = work == kill_key
        acc = (jnp.where(lane == 0, dice_sum, 0.0)
               + jnp.where(lane == 1, topk_sum(bce, sel_mask), 0.0))
        out_ref[l] = out_ref[l] + acc
        return carry

    jax.lax.fori_loop(0, num_layers - 1, aux_body, 0, unroll=False)

    # ---------------- final layer (losses + top-k ratio stats) ----------------
    # The ratio stats depend on exactly WHICH elements are selected, so this layer
    # keeps the exact value order with lowest-index tie-break (matches torch.topk /
    # lax.top_k); still only 2 cross-lane reduces per iteration and no float one-hot.
    last = num_layers - 1
    x = pred_ref[last].astype(jnp.float32)
    dice_sum, bce = dice_and_bce(x)

    neg_inf = jnp.float32(-jnp.inf)
    colr = jax.lax.broadcasted_iota(jnp.int32, (1, n), 1)

    def exact_body(_, work):
        mval = jnp.max(work, axis=-1, keepdims=True)
        first = jnp.min(jnp.where(work == mval, colr, n), axis=-1, keepdims=True)
        return jnp.where(colr == first, neg_inf, work)

    work = jax.lax.fori_loop(0, top_k, exact_body, bce, unroll=unroll_topk)
    sel_mask = work == neg_inf                       # exactly top_k per row

    pred_pos = x > 0.0
    acc = (jnp.where(lane == 0, dice_sum, 0.0)
           + jnp.where(lane == 1, topk_sum(bce, sel_mask), 0.0)
           + jnp.where(lane == 2, mxu_count(sel_mask & pred_pos), 0.0)
           + jnp.where(lane == 3, mxu_count(sel_mask & gt_pos), 0.0)
           + jnp.where(lane == 4, mxu_count(sel_mask & (pred_pos | gt_pos)), 0.0)
           + jnp.where(lane == 5, mxu_count(pred_pos), 0.0)
           + jnp.where(lane == 6, gt_cnt, 0.0))
    out_ref[last] = out_ref[last] + acc


# ----------------------------------------------------------------------------- wrapper
def _vmem_budgets():
    """(working-set budget, vmem_limit_bytes) with a generation-specific cap."""
    try:
        cap = int(getattr(pltpu.get_tpu_info(), "vmem_capacity_bytes", 0))
    except Exception:
        cap = 0
    if cap >= (96 << 20):            # v4/v5e/v5p/v6e: 128 MiB physical VMEM per core
        return 52 << 20, 72 << 20
    return 40 << 20, 56 << 20        # v7x-class (64 MiB per TC) or unknown: conservative


def _pick_tile_rows(m, n, num_layers, dtypes, *, budget_bytes, max_rows=512):
    """Largest row tile whose double-buffered streams AND in-kernel temporaries fit."""
    granule = 8
    for dt in dtypes:
        itemsize = jnp.dtype(dt).itemsize
        granule = max(granule, 8 * max(1, 4 // itemsize))    # f32:8, bf16:16, int8:32
    if m <= granule:
        return max(int(m), 1)                                # single full-row block
    pred_dt, tgt_dt, lm_dt = dtypes
    stream = 2 * (num_layers * jnp.dtype(pred_dt).itemsize   # x2: double-buffered
                  + jnp.dtype(tgt_dt).itemsize + jnp.dtype(lm_dt).itemsize)
    temps = 14 * 4        # ~peak live f32 (TM, N)-sized temporaries in the kernel body
    bytes_per_row = n * (stream + temps)
    tm = (budget_bytes // max(bytes_per_row, 1)) // granule * granule
    tm = max(granule, min(tm, max_rows, (m // granule) * granule))
    return int(tm)


def _mask_stats_pallas(pred_stack, tgt_mask, loss_mask, top_k):
    """Run the fused stats kernel.

    pred_stack: (L, M, N) logits (one slice per supervised decoder layer)
    tgt_mask:   (M, N)    binary targets
    loss_mask:  (M, N)    BCE loss mask
    Returns (L, 128) f32 partial sums (see kernel lane documentation).
    """
    num_layers, m, n = pred_stack.shape
    if m == 0:
        # deliberate deviation: reference would produce NaN ratios for 0 place scenes.
        return jnp.zeros((num_layers, 128), jnp.float32)

    budget, vmem_limit = _vmem_budgets()
    tile_rows = _pick_tile_rows(
        m, n, num_layers,
        (pred_stack.dtype, tgt_mask.dtype, loss_mask.dtype),
        budget_bytes=max(budget - n * 128 * 4, 4 << 20))

    num_tiles = pl.cdiv(m, tile_rows)
    num_splits = 2 if num_tiles > 1 else 1       # row split -> megacore even when L == 1
    tiles_per_split = pl.cdiv(num_tiles, num_splits)

    def row_block(s, i):
        # clamp so duplicated tail tiles of the second split stay in-bounds for the
        # DMA; their contributions are zeroed by the in-kernel valid-row mask.
        return jnp.minimum(s * tiles_per_split + i, num_tiles - 1)

    kernel = functools.partial(
        _mask_stats_kernel, top_k=top_k, num_rows=m, tile_rows=tile_rows,
        tiles_per_split=tiles_per_split,
        unroll_topk=(tile_rows * n) <= (128 * 2048))

    out = pl.pallas_call(
        kernel,
        out_shape=jax.ShapeDtypeStruct((num_splits, num_layers, 8, 128), jnp.float32),
        grid_spec=pltpu.PrefetchScalarGridSpec(
            num_scalar_prefetch=0,
            grid=(num_splits, tiles_per_split),
            in_specs=[
                pl.BlockSpec((num_layers, tile_rows, n),
                             lambda s, i: (0, row_block(s, i), 0)),   # pred (all layers)
                pl.BlockSpec((tile_rows, n), lambda s, i: (row_block(s, i), 0)),  # target
                pl.BlockSpec((tile_rows, n), lambda s, i: (row_block(s, i), 0)),  # loss mask
            ],
            out_specs=pl.BlockSpec((None, num_layers, 8, 128),
                                   lambda s, i: (s, 0, 0, 0)),
        ),
        compiler_params=pltpu.CompilerParams(
            dimension_semantics=("parallel", "arbitrary"),
            vmem_limit_bytes=vmem_limit),
    )(pred_stack, tgt_mask, loss_mask)
    return out.sum(axis=0)[:, 0, :]


def place_criterion_forward(pred, data, *, loss_weights, top_k,
                            deep_supervision=False, training=False):
    """PlaceCriterion.forward.  `pred` is a list of dicts with 'placement_masks'."""
    sel = data['task_is_place']                                    # (B,) bool
    target_masks = data['placement_masks'][sel]                    # (B', Q, N)
    num_scene, q, n = target_masks.shape

    target_flat = target_masks.reshape(-1, n)                      # (M, N)
    loss_masks = jnp.broadcast_to(data['placement_region'][sel][:, None, :],
                                  (num_scene, q, n)).reshape(-1, n)
    # TODO(synk): stream the (B', N) placement_region directly (Q-fold dedup) and the
    # binary targets/masks as int8 / pred as bf16 (kernel already casts in VMEM);
    # skipped here because the test feeds f32 like the reference module.

    layers = list(pred) if (deep_supervision and training) else [pred[-1]]
    pred_stack = jnp.stack(
        [p['placement_masks'][sel].reshape(-1, n) for p in layers], axis=0)  # (L, M, N)

    sums = _mask_stats_pallas(pred_stack, target_flat, loss_masks, top_k)    # (L, 128)

    m = target_flat.shape[0]
    num_objs = max(m, 1)
    topk_elems = max(m, 1) * top_k          # guards m == 0 (reference would NaN)

    def layer_losses(row):
        return {
            'placement_dice': (loss_weights['dice'], row[0] / num_objs),
            'placement_bce': (loss_weights['bce'], row[1] / (num_objs * top_k)),
        }

    last = sums[-1]
    losses = layer_losses(last)
    stats = {
        'placement_topk_pred_pos_ratio': last[2] / topk_elems,
        'placement_topk_gt_pos_ratio': last[3] / topk_elems,
        'placement_topk_hard_neg_ratio': last[4] / topk_elems,
        'num_pred_placements': last[5] / max(num_scene, 1),
        'num_gt_placements': last[6] / max(num_scene, 1),
    }
    if deep_supervision and training:
        for i in range(len(pred) - 1):
            li = layer_losses(sums[i])
            losses.update({f'layer{i + 1}/{k}': v for k, v in li.items()})
    return losses, stats


# ----------------------------------------------------------------------------- reference
def _reference_mask_criterion(key, out_mask, tgt_mask, loss_mask, loss_weights, top_k):
    m = out_mask.shape[0]
    num_objs = max(m, 1)
    p = jax.nn.sigmoid(out_mask)
    numerator = 2.0 * (p * tgt_mask).sum(-1)
    denominator = p.sum(-1) + tgt_mask.sum(-1)
    dice = (1.0 - (numerator + 1.0) / (denominator + 1.0)).sum() / num_objs
    bce = jnp.maximum(out_mask, 0.0) - out_mask * tgt_mask + jnp.log1p(jnp.exp(-jnp.abs(out_mask)))
    bce = bce * loss_mask
    bce_topk, topk_ids = jax.lax.top_k(bce, top_k)
    om = jnp.take_along_axis(out_mask, topk_ids, axis=1)
    tm_ = jnp.take_along_axis(tgt_mask, topk_ids, axis=1)
    losses = {
        f'{key}_dice': (loss_weights['dice'], dice),
        f'{key}_bce': (loss_weights['bce'], bce_topk.sum() / (num_objs * top_k)),
    }
    stats = {
        f'{key}_topk_pred_pos_ratio': (om > 0).astype(jnp.float32).mean(),
        f'{key}_topk_gt_pos_ratio': (tm_ > 0).astype(jnp.float32).mean(),
        f'{key}_topk_hard_neg_ratio': ((om > 0) | (tm_ > 0)).astype(jnp.float32).mean(),
    }
    return losses, stats


def _reference_place_criterion(pred, data, *, loss_weights, top_k,
                               deep_supervision, training):
    sel = data['task_is_place']
    pred_masks = pred[-1]['placement_masks'][sel]
    target_masks = data['placement_masks'][sel]
    num_pred = (pred_masks > 0).sum()
    num_gt = (target_masks > 0).sum()
    num_scene = pred_masks.shape[0]
    n = target_masks.shape[-1]
    loss_masks = jnp.broadcast_to(data['placement_region'][sel][:, None, :],
                                  target_masks.shape).reshape(-1, n)
    target_flat = target_masks.reshape(-1, n)
    pred_flat = pred_masks.reshape(-1, n)
    losses, stats = _reference_mask_criterion('placement', pred_flat, target_flat,
                                              loss_masks, loss_weights, top_k)
    stats['num_pred_placements'] = num_pred / max(num_scene, 1)
    stats['num_gt_placements'] = num_gt / max(num_scene, 1)
    if deep_supervision and training:
        for i, p in enumerate(pred[:-1]):
            pm = p['placement_masks'][sel].reshape(-1, n)
            ml, _ = _reference_mask_criterion('placement', pm, target_flat,
                                              loss_masks, loss_weights, top_k)
            losses.update({f'layer{i + 1}/{k}': v for k, v in ml.items()})
    return losses, stats


# ----------------------------------------------------------------------------- main
if __name__ == "__main__":
    import numpy as np

    TOP_K = 8
    LOSS_WEIGHTS = {'bce': 1.0, 'dice': 1.0}

    def run_case(seed, B, Q, N):
        key = jax.random.PRNGKey(seed)
        k1, k2, k3, k4 = jax.random.split(key, 4)
        # pred: two decoder layers (deep supervision path exercises the first one)
        pred_layers = [
            {'placement_masks': jax.random.normal(k1, (B, Q, N), jnp.float32)},
            {'placement_masks': jax.random.normal(k2, (B, Q, N), jnp.float32)},
        ]
        data = {
            'task_is_place': jnp.array([True] * B),
            'placement_masks': (jax.random.uniform(k3, (B, Q, N)) > 0.5).astype(jnp.float32),
            # keep the region mostly valid so per-row unmasked count >> top_k (avoids ties at 0)
            'placement_region': (jax.random.uniform(k4, (B, N)) > 0.1).astype(jnp.float32),
        }

        losses, stats = place_criterion_forward(
            pred_layers, data, loss_weights=LOSS_WEIGHTS, top_k=TOP_K,
            deep_supervision=True, training=True)
        jax.block_until_ready((losses, stats))

        ref_losses, ref_stats = _reference_place_criterion(
            pred_layers, data, loss_weights=LOSS_WEIGHTS, top_k=TOP_K,
            deep_supervision=True, training=True)

        for k in ref_losses:
            w_k, v_k = losses[k]
            w_r, v_r = ref_losses[k]
            assert w_k == w_r
            np.testing.assert_allclose(np.asarray(v_k), np.asarray(v_r),
                                       rtol=1e-4, atol=1e-5)
        for k in ref_stats:
            np.testing.assert_allclose(np.asarray(stats[k]), np.asarray(ref_stats[k]),
                                       rtol=1e-4, atol=1e-5)

    run_case(0, B=2, Q=4, N=256)   # M = 8: exact tile fit, single split
    run_case(1, B=2, Q=5, N=256)   # M = 10: partial-tile mask + 2-way row split
    print("KERNEL_OK")
</pallas_src>

<mosaic_0001>
module attributes {stable_mosaic.version = 11 : i64} {
  func.func @_mask_stats_kernel(%arg0: i32, %arg1: i32, %arg2: memref<2x8x256xf32, #tpu.memory_space<vmem>>, %arg3: memref<8x256xf32, #tpu.memory_space<vmem>>, %arg4: memref<8x256xf32, #tpu.memory_space<vmem>>, %arg5: memref<1x2x8x128xf32, #tpu.memory_space<vmem>>) attributes {dimension_semantics = [#tpu.dimension_semantics<parallel>, #tpu.dimension_semantics<arbitrary>], iteration_bounds = array<i64: 1, 1>, scalar_prefetch = 0 : i64, scratch_operands = 0 : i64, tpu.core_type = #tpu.core_type<tc>, window_params = [{transform_indices = @transform_0, window_bounds = array<i64: 2, 8, 256>}, {transform_indices = @transform_1, window_bounds = array<i64: 8, 256>}, {transform_indices = @transform_2, window_bounds = array<i64: 8, 256>}, {transform_indices = @transform_3, window_bounds = array<i64: 1, 2, 8, 128>}]} {
    %c0_i32 = arith.constant 0 : i32
    %0 = arith.cmpi eq, %arg1, %c0_i32 : i32
    %1 = arith.extui %0 : i1 to i32
    %c0_i32_0 = arith.constant 0 : i32
    %2 = arith.cmpi ne, %1, %c0_i32_0 : i32
    scf.if %2 {
      %cst_140 = arith.constant 0.000000e+00 : f32
      %438 = vector.broadcast %cst_140 : f32 to vector<2x8x128xf32>
      %c0_141 = arith.constant 0 : index
      %c0_142 = arith.constant 0 : index
      %c0_143 = arith.constant 0 : index
      %c0_144 = arith.constant 0 : index
      %439 = vector.load %arg5[%c0_141, %c0_142, %c0_143, %c0_144] : memref<1x2x8x128xf32, #tpu.memory_space<vmem>>, vector<1x2x8x128xf32>
      %440 = vector.shape_cast %439 : vector<1x2x8x128xf32> to vector<2x8x128xf32>
      %441 = vector.shape_cast %438 : vector<2x8x128xf32> to vector<1x2x8x128xf32>
      tpu.vector_store %arg5[%c0_141, %c0_142, %c0_143, %c0_144], %441 {strides = array<i32>} : memref<1x2x8x128xf32, #tpu.memory_space<vmem>>, vector<1x2x8x128xf32>,
    } else {
    }
    %c0 = arith.constant 0 : index
    %c0_1 = arith.constant 0 : index
    %3 = vector.load %arg3[%c0, %c0_1] : memref<8x256xf32, #tpu.memory_space<vmem>>, vector<8x256xf32>
    %c0_2 = arith.constant 0 : index
    %c0_3 = arith.constant 0 : index
    %4 = vector.load %arg4[%c0_2, %c0_3] : memref<8x256xf32, #tpu.memory_space<vmem>>, vector<8x256xf32>
    %c1_i32 = arith.constant 1 : i32
    %5 = arith.muli %arg0, %c1_i32 : i32
    %6 = arith.addi %5, %arg1 : i32
    %7 = tpu.iota {dimensions = array<i32: 0>} : vector<8x1xi32>
    %c8_i32 = arith.constant 8 : i32
    %8 = arith.muli %6, %c8_i32 : i32
    %9 = vector.broadcast %8 : i32 to vector<8x1xi32>
    %10 = arith.addi %9, %7 : vector<8x1xi32>
    %c8_i32_4 = arith.constant 8 : i32
    %11 = vector.broadcast %c8_i32_4 : i32 to vector<8x1xi32>
    %12 = arith.cmpi slt, %10, %11 : vector<8x1xi32>
    %13 = tpu.iota {dimensions = array<i32: 1>} : vector<256x128xi32>
    %c0_i32_5 = arith.constant 0 : i32
    %14 = vector.broadcast %c0_i32_5 : i32 to vector<256x128xi32>
    %15 = arith.cmpi eq, %13, %14 : vector<256x128xi32>
    %16 = arith.extui %15 : vector<256x128xi1> to vector<256x128xi32>
    %17 = arith.sitofp %16 : vector<256x128xi32> to vector<256x128xf32>
    %cst = arith.constant dense<0.000000e+00> : vector<8xf32>
    %18 = vector.multi_reduction <add>, %3, %cst [1] : vector<8x256xf32> to vector<8xf32>
    %19 = vector.shape_cast %18 : vector<8xf32> to vector<8x1xf32>
    %cst_6 = arith.constant 0.000000e+00 : f32
    %20 = vector.broadcast %cst_6 : f32 to vector<8x256xf32>
    %21 = arith.cmpf ogt, %3, %20 : vector<8x256xf32>
    %22 = arith.extui %21 : vector<8x256xi1> to vector<8x256xi32>
    %23 = arith.sitofp %22 : vector<8x256xi32> to vector<8x256xf32>
    %cst_7 = arith.constant dense<0.000000e+00> : vector<8x128xf32>
    %24 = tpu.matmul %23, %17, %cst_7 {dimension_numbers = #tpu.dot_dimension_numbers<[1], [0], [0], [1], [0, 0, 1, 1], [], []>} : vector<8x256xf32>, vector<256x128xf32>, vector<8x128xf32> -> vector<8x128xf32>
    %cst_8 = arith.constant 0.000000e+00 : f32
    %25 = vector.shape_cast %12 : vector<8x1xi1> to vector<8x1xi1>
    %26 = vector.broadcast %25 : vector<8x1xi1> to vector<8x128xi1>
    %27 = vector.broadcast %cst_8 : f32 to vector<8x128xf32>
    %28 = arith.select %26, %24, %27 : vector<8x128xi1>, vector<8x128xf32>
    %29 = vector.shape_cast %28 : vector<8x128xf32> to vector<1x8x128xf32>
    %cst_9 = arith.constant dense<0.000000e+00> : vector<1xf32>
    %30 = vector.multi_reduction <add>, %29, %cst_9 [1, 2] : vector<1x8x128xf32> to vector<1xf32>
    %31 = vector.shape_cast %30 : vector<1xf32> to vector<1x1x1xf32>
    %32 = vector.extract %31[0, 0, 0] : f32 from vector<1x1x1xf32>
    %33 = tpu.iota {dimensions = array<i32: 1>} : vector<8x128xi32>
    %34 = tpu.iota {dimensions = array<i32: 1>} : vector<1x256xi32>
    %c255_i32 = arith.constant 255 : i32
    %35 = vector.broadcast %c255_i32 : i32 to vector<1x256xi32>
    %36 = arith.subi %35, %34 : vector<1x256xi32>
    %c-256_i32 = arith.constant -256 : i32
    %c-2147483648_i32 = arith.constant -2147483648 : i32
    %c0_i32_10 = arith.constant 0 : i32
    %37 = arith.index_cast %c0_i32_10 : i32 to index
    %c0_11 = arith.constant 0 : index
    %c0_12 = arith.constant 0 : index
    %38 = vector.load %arg2[%37, %c0_11, %c0_12] : memref<2x8x256xf32, #tpu.memory_space<vmem>>, vector<1x8x256xf32>
    %39 = vector.shape_cast %38 : vector<1x8x256xf32> to vector<8x256xf32>
    %40 = math.absf %39 : vector<8x256xf32>
    %cst_13 = arith.constant 0.000000e+00 : f32
    %41 = vector.broadcast %cst_13 : f32 to vector<8x256xf32>
    %42 = arith.subf %41, %40 : vector<8x256xf32>
    %43 = math.exp %42 : vector<8x256xf32>
    %cst_14 = arith.constant 1.000000e+00 : f32
    %44 = vector.broadcast %cst_14 : f32 to vector<8x256xf32>
    %45 = arith.addf %44, %43 : vector<8x256xf32>
    %cst_15 = arith.constant 1.000000e+00 : f32
    %46 = vector.broadcast %cst_15 : f32 to vector<8x256xf32>
    %47 = arith.divf %46, %45 : vector<8x256xf32>
    %cst_16 = arith.constant 0.000000e+00 : f32
    %48 = vector.broadcast %cst_16 : f32 to vector<8x256xf32>
    %49 = arith.cmpf oge, %39, %48 : vector<8x256xf32>
    %cst_17 = arith.constant 1.000000e+00 : f32
    %50 = vector.broadcast %cst_17 : f32 to vector<8x256xf32>
    %51 = arith.subf %50, %47 : vector<8x256xf32>
    %52 = arith.select %49, %47, %51 : vector<8x256xi1>, vector<8x256xf32>
    %cst_18 = arith.constant 0.000000e+00 : f32
    %53 = vector.broadcast %cst_18 : f32 to vector<8x256xf32>
    %54 = arith.maximumf %39, %53 : vector<8x256xf32>
    %55 = arith.mulf %39, %3 : vector<8x256xf32>
    %56 = arith.subf %54, %55 : vector<8x256xf32>
    %57 = math.log1p %43 : vector<8x256xf32>
    %58 = arith.addf %56, %57 : vector<8x256xf32>
    %59 = arith.mulf %58, %4 : vector<8x256xf32>
    %cst_19 = arith.constant dense<0.000000e+00> : vector<8xf32>
    %60 = vector.multi_reduction <add>, %52, %cst_19 [1] : vector<8x256xf32> to vector<8xf32>
    %61 = vector.shape_cast %60 : vector<8xf32> to vector<8x1xf32>
    %62 = arith.mulf %52, %3 : vector<8x256xf32>
    %cst_20 = arith.constant dense<0.000000e+00> : vector<8xf32>
    %63 = vector.multi_reduction <add>, %62, %cst_20 [1] : vector<8x256xf32> to vector<8xf32>
    %64 = vector.shape_cast %63 : vector<8xf32> to vector<8x1xf32>
    %cst_21 = arith.constant 2.000000e+00 : f32
    %65 = vector.broadcast %cst_21 : f32 to vector<8x1xf32>
    %66 = arith.mulf %65, %64 : vector<8x1xf32>
    %cst_22 = arith.constant 1.000000e+00 : f32
    %67 = vector.broadcast %cst_22 : f32 to vector<8x1xf32>
    %68 = arith.addf %66, %67 : vector<8x1xf32>
    %69 = arith.addf %61, %19 : vector<8x1xf32>
    %cst_23 = arith.constant 1.000000e+00 : f32
    %70 = vector.broadcast %cst_23 : f32 to vector<8x1xf32>
    %71 = arith.addf %69, %70 : vector<8x1xf32>
    %72 = arith.divf %68, %71 : vector<8x1xf32>
    %cst_24 = arith.constant 1.000000e+00 : f32
    %73 = vector.broadcast %cst_24 : f32 to vector<8x1xf32>
    %74 = arith.subf %73, %72 : vector<8x1xf32>
    %cst_25 = arith.constant 0.000000e+00 : f32
    %75 = vector.broadcast %cst_25 : f32 to vector<8x1xf32>
    %76 = arith.select %12, %74, %75 : vector<8x1xi1>, vector<8x1xf32>
    %77 = vector.shape_cast %76 : vector<8x1xf32> to vector<1x8x1xf32>
    %cst_26 = arith.constant dense<0.000000e+00> : vector<1xf32>
    %78 = vector.multi_reduction <add>, %77, %cst_26 [1, 2] : vector<1x8x1xf32> to vector<1xf32>
    %79 = vector.shape_cast %78 : vector<1xf32> to vector<1x1x1xf32>
    %80 = vector.extract %79[0, 0, 0] : f32 from vector<1x1x1xf32>
    %81 = tpu.bitcast %59 : vector<8x256xf32> -> vector<8x256xi32>
    %82 = vector.broadcast %c-256_i32 : i32 to vector<8x256xi32>
    %83 = arith.andi %81, %82 : vector<8x256xi32>
    %84 = vector.broadcast %36 : vector<1x256xi32> to vector<8x256xi32>
    %85 = arith.ori %83, %84 : vector<8x256xi32>
    %c0_i32_27 = arith.constant 0 : i32
    %cst_28 = arith.constant dense<-2147483648> : vector<8xi32>
    %86 = vector.multi_reduction <maxsi>, %85, %cst_28 [1] : vector<8x256xi32> to vector<8xi32>
    %87 = vector.shape_cast %86 : vector<8xi32> to vector<8x1xi32>
    %88 = vector.broadcast %87 : vector<8x1xi32> to vector<8x256xi32>
    %89 = arith.cmpi eq, %85, %88 : vector<8x256xi32>
    %90 = vector.broadcast %c-2147483648_i32 : i32 to vector<8x256xi32>
    %91 = arith.select %89, %90, %85 : vector<8x256xi1>, vector<8x256xi32>
    %c1_i32_29 = arith.constant 1 : i32
    %cst_30 = arith.constant dense<-2147483648> : vector<8xi32>
    %92 = vector.multi_reduction <maxsi>, %91, %cst_30 [1] : vector<8x256xi32> to vector<8xi32>
    %93 = vector.shape_cast %92 : vector<8xi32> to vector<8x1xi32>
    %94 = vector.broadcast %93 : vector<8x1xi32> to vector<8x256xi32>
    %95 = arith.cmpi eq, %91, %94 : vector<8x256xi32>
    %96 = vector.broadcast %c-2147483648_i32 : i32 to vector<8x256xi32>
    %97 = arith.select %95, %96, %91 : vector<8x256xi1>, vector<8x256xi32>
    %c2_i32 = arith.constant 2 : i32
    %cst_31 = arith.constant dense<-2147483648> : vector<8xi32>
    %98 = vector.multi_reduction <maxsi>, %97, %cst_31 [1] : vector<8x256xi32> to vector<8xi32>
    %99 = vector.shape_cast %98 : vector<8xi32> to vector<8x1xi32>
    %100 = vector.broadcast %99 : vector<8x1xi32> to vector<8x256xi32>
    %101 = arith.cmpi eq, %97, %100 : vector<8x256xi32>
    %102 = vector.broadcast %c-2147483648_i32 : i32 to vector<8x256xi32>
    %103 = arith.select %101, %102, %97 : vector<8x256xi1>, vector<8x256xi32>
    %c3_i32 = arith.constant 3 : i32
    %cst_32 = arith.constant dense<-2147483648> : vector<8xi32>
    %104 = vector.multi_reduction <maxsi>, %103, %cst_32 [1] : vector<8x256xi32> to vector<8xi32>
    %105 = vector.shape_cast %104 : vector<8xi32> to vector<8x1xi32>
    %106 = vector.broadcast %105 : vector<8x1xi32> to vector<8x256xi32>
    %107 = arith.cmpi eq, %103, %106 : vector<8x256xi32>
    %108 = vector.broadcast %c-2147483648_i32 : i32 to vector<8x256xi32>
    %109 = arith.select %107, %108, %103 : vector<8x256xi1>, vector<8x256xi32>
    %c4_i32 = arith.constant 4 : i32
    %cst_33 = arith.constant dense<-2147483648> : vector<8xi32>
    %110 = vector.multi_reduction <maxsi>, %109, %cst_33 [1] : vector<8x256xi32> to vector<8xi32>
    %111 = vector.shape_cast %110 : vector<8xi32> to vector<8x1xi32>
    %112 = vector.broadcast %111 : vector<8x1xi32> to vector<8x256xi32>
    %113 = arith.cmpi eq, %109, %112 : vector<8x256xi32>
    %114 = vector.broadcast %c-2147483648_i32 : i32 to vector<8x256xi32>
    %115 = arith.select %113, %114, %109 : vector<8x256xi1>, vector<8x256xi32>
    %c5_i32 = arith.constant 5 : i32
    %cst_34 = arith.constant dense<-2147483648> : vector<8xi32>
    %116 = vector.multi_reduction <maxsi>, %115, %cst_34 [1] : vector<8x256xi32> to vector<8xi32>
    %117 = vector.shape_cast %116 : vector<8xi32> to vector<8x1xi32>
    %118 = vector.broadcast %117 : vector<8x1xi32> to vector<8x256xi32>
    %119 = arith.cmpi eq, %115, %118 : vector<8x256xi32>
    %120 = vector.broadcast %c-2147483648_i32 : i32 to vector<8x256xi32>
    %121 = arith.select %119, %120, %115 : vector<8x256xi1>, vector<8x256xi32>
    %c6_i32 = arith.constant 6 : i32
    %cst_35 = arith.constant dense<-2147483648> : vector<8xi32>
    %122 = vector.multi_reduction <maxsi>, %121, %cst_35 [1] : vector<8x256xi32> to vector<8xi32>
    %123 = vector.shape_cast %122 : vector<8xi32> to vector<8x1xi32>
    %124 = vector.broadcast %123 : vector<8x1xi32> to vector<8x256xi32>
    %125 = arith.cmpi eq, %121, %124 : vector<8x256xi32>
    %126 = vector.broadcast %c-2147483648_i32 : i32 to vector<8x256xi32>
    %127 = arith.select %125, %126, %121 : vector<8x256xi1>, vector<8x256xi32>
    %c7_i32 = arith.constant 7 : i32
    %cst_36 = arith.constant dense<-2147483648> : vector<8xi32>
    %128 = vector.multi_reduction <maxsi>, %127, %cst_36 [1] : vector<8x256xi32> to vector<8xi32>
    %129 = vector.shape_cast %128 : vector<8xi32> to vector<8x1xi32>
    %130 = vector.broadcast %129 : vector<8x1xi32> to vector<8x256xi32>
    %131 = arith.cmpi eq, %127, %130 : vector<8x256xi32>
    %132 = vector.broadcast %c-2147483648_i32 : i32 to vector<8x256xi32>
    %133 = arith.select %131, %132, %127 : vector<8x256xi1>, vector<8x256xi32>
    %134 = vector.broadcast %c-2147483648_i32 : i32 to vector<8x256xi32>
    %135 = arith.cmpi eq, %133, %134 : vector<8x256xi32>
    %c0_i32_37 = arith.constant 0 : i32
    %136 = vector.broadcast %c0_i32_37 : i32 to vector<8x128xi32>
    %137 = arith.cmpi eq, %33, %136 : vector<8x128xi32>
    %cst_38 = arith.constant 0.000000e+00 : f32
    %138 = vector.broadcast %80 : f32 to vector<8x128xf32>
    %139 = vector.broadcast %cst_38 : f32 to vector<8x128xf32>
    %140 = arith.select %137, %138, %139 : vector<8x128xi1>, vector<8x128xf32>
    %c1_i32_39 = arith.constant 1 : i32
    %141 = vector.broadcast %c1_i32_39 : i32 to vector<8x128xi32>
    %142 = arith.cmpi eq, %33, %141 : vector<8x128xi32>
    %cst_40 = arith.constant 0.000000e+00 : f32
    %143 = vector.broadcast %cst_40 : f32 to vector<8x256xf32>
    %144 = arith.select %135, %59, %143 : vector<8x256xi1>, vector<8x256xf32>
    %cst_41 = arith.constant dense<0.000000e+00> : vector<8xf32>
    %145 = vector.multi_reduction <add>, %144, %cst_41 [1] : vector<8x256xf32> to vector<8xf32>
    %146 = vector.shape_cast %145 : vector<8xf32> to vector<8x1xf32>
    %cst_42 = arith.constant 0.000000e+00 : f32
    %147 = vector.broadcast %cst_42 : f32 to vector<8x1xf32>
    %148 = arith.select %12, %146, %147 : vector<8x1xi1>, vector<8x1xf32>
    %149 = vector.shape_cast %148 : vector<8x1xf32> to vector<1x8x1xf32>
    %cst_43 = arith.constant dense<0.000000e+00> : vector<1xf32>
    %150 = vector.multi_reduction <add>, %149, %cst_43 [1, 2] : vector<1x8x1xf32> to vector<1xf32>
    %151 = vector.shape_cast %150 : vector<1xf32> to vector<1x1x1xf32>
    %152 = vector.extract %151[0, 0, 0] : f32 from vector<1x1x1xf32>
    %cst_44 = arith.constant 0.000000e+00 : f32
    %153 = vector.broadcast %152 : f32 to vector<8x128xf32>
    %154 = vector.broadcast %cst_44 : f32 to vector<8x128xf32>
    %155 = arith.select %142, %153, %154 : vector<8x128xi1>, vector<8x128xf32>
    %156 = arith.addf %140, %155 : vector<8x128xf32>
    %c0_45 = arith.constant 0 : index
    %157 = arith.index_cast %c0_i32_10 : i32 to index
    %c0_46 = arith.constant 0 : index
    %c0_47 = arith.constant 0 : index
    %158 = vector.load %arg5[%c0_45, %157, %c0_46, %c0_47] : memref<1x2x8x128xf32, #tpu.memory_space<vmem>>, vector<1x1x8x128xf32>
    %159 = vector.shape_cast %158 : vector<1x1x8x128xf32> to vector<8x128xf32>
    %160 = arith.addf %159, %156 : vector<8x128xf32>
    %c0_48 = arith.constant 0 : index
    %161 = arith.index_cast %c0_i32_10 : i32 to index
    %c0_49 = arith.constant 0 : index
    %c0_50 = arith.constant 0 : index
    %162 = vector.load %arg5[%c0_48, %161, %c0_49, %c0_50] : memref<1x2x8x128xf32, #tpu.memory_space<vmem>>, vector<1x1x8x128xf32>
    %163 = vector.shape_cast %162 : vector<1x1x8x128xf32> to vector<8x128xf32>
    %164 = vector.shape_cast %160 : vector<8x128xf32> to vector<1x1x8x128xf32>
    tpu.vector_store %arg5[%c0_48, %161, %c0_49, %c0_50], %164 {strides = array<i32>} : memref<1x2x8x128xf32, #tpu.memory_space<vmem>>, vector<1x1x8x128xf32>,
    %c1_i32_51 = arith.constant 1 : i32
    %c1 = arith.constant 1 : index
    %c0_52 = arith.constant 0 : index
    %c0_53 = arith.constant 0 : index
    %165 = vector.load %arg2[%c1, %c0_52, %c0_53] : memref<2x8x256xf32, #tpu.memory_space<vmem>>, vector<1x8x256xf32>
    %166 = vector.shape_cast %165 : vector<1x8x256xf32> to vector<8x256xf32>
    %167 = math.absf %166 : vector<8x256xf32>
    %cst_54 = arith.constant 0.000000e+00 : f32
    %168 = vector.broadcast %cst_54 : f32 to vector<8x256xf32>
    %169 = arith.subf %168, %167 : vector<8x256xf32>
    %170 = math.exp %169 : vector<8x256xf32>
    %cst_55 = arith.constant 1.000000e+00 : f32
    %171 = vector.broadcast %cst_55 : f32 to vector<8x256xf32>
    %172 = arith.addf %171, %170 : vector<8x256xf32>
    %cst_56 = arith.constant 1.000000e+00 : f32
    %173 = vector.broadcast %cst_56 : f32 to vector<8x256xf32>
    %174 = arith.divf %173, %172 : vector<8x256xf32>
    %cst_57 = arith.constant 0.000000e+00 : f32
    %175 = vector.broadcast %cst_57 : f32 to vector<8x256xf32>
    %176 = arith.cmpf oge, %166, %175 : vector<8x256xf32>
    %cst_58 = arith.constant 1.000000e+00 : f32
    %177 = vector.broadcast %cst_58 : f32 to vector<8x256xf32>
    %178 = arith.subf %177, %174 : vector<8x256xf32>
    %179 = arith.select %176, %174, %178 : vector<8x256xi1>, vector<8x256xf32>
    %cst_59 = arith.constant 0.000000e+00 : f32
    %180 = vector.broadcast %cst_59 : f32 to vector<8x256xf32>
    %181 = arith.maximumf %166, %180 : vector<8x256xf32>
    %182 = arith.mulf %166, %3 : vector<8x256xf32>
    %183 = arith.subf %181, %182 : vector<8x256xf32>
    %184 = math.log1p %170 : vector<8x256xf32>
    %185 = arith.addf %183, %184 : vector<8x256xf32>
    %186 = arith.mulf %185, %4 : vector<8x256xf32>
    %cst_60 = arith.constant dense<0.000000e+00> : vector<8xf32>
    %187 = vector.multi_reduction <add>, %179, %cst_60 [1] : vector<8x256xf32> to vector<8xf32>
    %188 = vector.shape_cast %187 : vector<8xf32> to vector<8x1xf32>
    %189 = arith.mulf %179, %3 : vector<8x256xf32>
    %cst_61 = arith.constant dense<0.000000e+00> : vector<8xf32>
    %190 = vector.multi_reduction <add>, %189, %cst_61 [1] : vector<8x256xf32> to vector<8xf32>
    %191 = vector.shape_cast %190 : vector<8xf32> to vector<8x1xf32>
    %cst_62 = arith.constant 2.000000e+00 : f32
    %192 = vector.broadcast %cst_62 : f32 to vector<8x1xf32>
    %193 = arith.mulf %192, %191 : vector<8x1xf32>
    %cst_63 = arith.constant 1.000000e+00 : f32
    %194 = vector.broadcast %cst_63 : f32 to vector<8x1xf32>
    %195 = arith.addf %193, %194 : vector<8x1xf32>
    %196 = arith.addf %188, %19 : vector<8x1xf32>
    %cst_64 = arith.constant 1.000000e+00 : f32
    %197 = vector.broadcast %cst_64 : f32 to vector<8x1xf32>
    %198 = arith.addf %196, %197 : vector<8x1xf32>
    %199 = arith.divf %195, %198 : vector<8x1xf32>
    %cst_65 = arith.constant 1.000000e+00 : f32
    %200 = vector.broadcast %cst_65 : f32 to vector<8x1xf32>
    %201 = arith.subf %200, %199 : vector<8x1xf32>
    %cst_66 = arith.constant 0.000000e+00 : f32
    %202 = vector.broadcast %cst_66 : f32 to vector<8x1xf32>
    %203 = arith.select %12, %201, %202 : vector<8x1xi1>, vector<8x1xf32>
    %204 = vector.shape_cast %203 : vector<8x1xf32> to vector<1x8x1xf32>
    %cst_67 = arith.constant dense<0.000000e+00> : vector<1xf32>
    %205 = vector.multi_reduction <add>, %204, %cst_67 [1, 2] : vector<1x8x1xf32> to vector<1xf32>
    %206 = vector.shape_cast %205 : vector<1xf32> to vector<1x1x1xf32>
    %207 = vector.extract %206[0, 0, 0] : f32 from vector<1x1x1xf32>
    %208 = tpu.iota {dimensions = array<i32: 1>} : vector<1x256xi32>
    %cst_68 = arith.constant 0xFF800000 : f32
    %c0_i32_69 = arith.constant 0 : i32
    %cst_70 = arith.constant dense<0xFF800000> : vector<8xf32>
    %209 = vector.multi_reduction <maximumf>, %186, %cst_70 [1] : vector<8x256xf32> to vector<8xf32>
    %210 = vector.shape_cast %209 : vector<8xf32> to vector<8x1xf32>
    %211 = vector.broadcast %210 : vector<8x1xf32> to vector<8x256xf32>
    %212 = arith.cmpf oeq, %186, %211 : vector<8x256xf32>
    %c256_i32 = arith.constant 256 : i32
    %213 = vector.shape_cast %208 : vector<1x256xi32> to vector<1x256xi32>
    %214 = vector.broadcast %213 : vector<1x256xi32> to vector<8x256xi32>
    %215 = vector.broadcast %c256_i32 : i32 to vector<8x256xi32>
    %216 = arith.select %212, %214, %215 : vector<8x256xi1>, vector<8x256xi32>
    %cst_71 = arith.constant dense<2147483647> : vector<8xi32>
    %217 = vector.multi_reduction <minsi>, %216, %cst_71 [1] : vector<8x256xi32> to vector<8xi32>
    %218 = vector.shape_cast %217 : vector<8xi32> to vector<8x1xi32>
    %219 = vector.broadcast %208 : vector<1x256xi32> to vector<8x256xi32>
    %220 = vector.broadcast %218 : vector<8x1xi32> to vector<8x256xi32>
    %221 = arith.cmpi eq, %219, %220 : vector<8x256xi32>
    %222 = vector.broadcast %cst_68 : f32 to vector<8x256xf32>
    %223 = arith.select %221, %222, %186 : vector<8x256xi1>, vector<8x256xf32>
    %c1_i32_72 = arith.constant 1 : i32
    %cst_73 = arith.constant dense<0xFF800000> : vector<8xf32>
    %224 = vector.multi_reduction <maximumf>, %223, %cst_73 [1] : vector<8x256xf32> to vector<8xf32>
    %225 = vector.shape_cast %224 : vector<8xf32> to vector<8x1xf32>
    %226 = vector.broadcast %225 : vector<8x1xf32> to vector<8x256xf32>
    %227 = arith.cmpf oeq, %223, %226 : vector<8x256xf32>
    %c256_i32_74 = arith.constant 256 : i32
    %228 = vector.shape_cast %208 : vector<1x256xi32> to vector<1x256xi32>
    %229 = vector.broadcast %228 : vector<1x256xi32> to vector<8x256xi32>
    %230 = vector.broadcast %c256_i32_74 : i32 to vector<8x256xi32>
    %231 = arith.select %227, %229, %230 : vector<8x256xi1>, vector<8x256xi32>
    %cst_75 = arith.constant dense<2147483647> : vector<8xi32>
    %232 = vector.multi_reduction <minsi>, %231, %cst_75 [1] : vector<8x256xi32> to vector<8xi32>
    %233 = vector.shape_cast %232 : vector<8xi32> to vector<8x1xi32>
    %234 = vector.broadcast %208 : vector<1x256xi32> to vector<8x256xi32>
    %235 = vector.broadcast %233 : vector<8x1xi32> to vector<8x256xi32>
    %236 = arith.cmpi eq, %234, %235 : vector<8x256xi32>
    %237 = vector.broadcast %cst_68 : f32 to vector<8x256xf32>
    %238 = arith.select %236, %237, %223 : vector<8x256xi1>, vector<8x256xf32>
    %c2_i32_76 = arith.constant 2 : i32
    %cst_77 = arith.constant dense<0xFF800000> : vector<8xf32>
    %239 = vector.multi_reduction <maximumf>, %238, %cst_77 [1] : vector<8x256xf32> to vector<8xf32>
    %240 = vector.shape_cast %239 : vector<8xf32> to vector<8x1xf32>
    %241 = vector.broadcast %240 : vector<8x1xf32> to vector<8x256xf32>
    %242 = arith.cmpf oeq, %238, %241 : vector<8x256xf32>
    %c256_i32_78 = arith.constant 256 : i32
    %243 = vector.shape_cast %208 : vector<1x256xi32> to vector<1x256xi32>
    %244 = vector.broadcast %243 : vector<1x256xi32> to vector<8x256xi32>
    %245 = vector.broadcast %c256_i32_78 : i32 to vector<8x256xi32>
    %246 = arith.select %242, %244, %245 : vector<8x256xi1>, vector<8x256xi32>
    %cst_79 = arith.constant dense<2147483647> : vector<8xi32>
    %247 = vector.multi_reduction <minsi>, %246, %cst_79 [1] : vector<8x256xi32> to vector<8xi32>
    %248 = vector.shape_cast %247 : vector<8xi32> to vector<8x1xi32>
    %249 = vector.broadcast %208 : vector<1x256xi32> to vector<8x256xi32>
    %250 = vector.broadcast %248 : vector<8x1xi32> to vector<8x256xi32>
    %251 = arith.cmpi eq, %249, %250 : vector<8x256xi32>
    %252 = vector.broadcast %cst_68 : f32 to vector<8x256xf32>
    %253 = arith.select %251, %252, %238 : vector<8x256xi1>, vector<8x256xf32>
    %c3_i32_80 = arith.constant 3 : i32
    %cst_81 = arith.constant dense<0xFF800000> : vector<8xf32>
    %254 = vector.multi_reduction <maximumf>, %253, %cst_81 [1] : vector<8x256xf32> to vector<8xf32>
    %255 = vector.shape_cast %254 : vector<8xf32> to vector<8x1xf32>
    %256 = vector.broadcast %255 : vector<8x1xf32> to vector<8x256xf32>
    %257 = arith.cmpf oeq, %253, %256 : vector<8x256xf32>
    %c256_i32_82 = arith.constant 256 : i32
    %258 = vector.shape_cast %208 : vector<1x256xi32> to vector<1x256xi32>
    %259 = vector.broadcast %258 : vector<1x256xi32> to vector<8x256xi32>
    %260 = vector.broadcast %c256_i32_82 : i32 to vector<8x256xi32>
    %261 = arith.select %257, %259, %260 : vector<8x256xi1>, vector<8x256xi32>
    %cst_83 = arith.constant dense<2147483647> : vector<8xi32>
    %262 = vector.multi_reduction <minsi>, %261, %cst_83 [1] : vector<8x256xi32> to vector<8xi32>
    %263 = vector.shape_cast %262 : vector<8xi32> to vector<8x1xi32>
    %264 = vector.broadcast %208 : vector<1x256xi32> to vector<8x256xi32>
    %265 = vector.broadcast %263 : vector<8x1xi32> to vector<8x256xi32>
    %266 = arith.cmpi eq, %264, %265 : vector<8x256xi32>
    %267 = vector.broadcast %cst_68 : f32 to vector<8x256xf32>
    %268 = arith.select %266, %267, %253 : vector<8x256xi1>, vector<8x256xf32>
    %c4_i32_84 = arith.constant 4 : i32
    %cst_85 = arith.constant dense<0xFF800000> : vector<8xf32>
    %269 = vector.multi_reduction <maximumf>, %268, %cst_85 [1] : vector<8x256xf32> to vector<8xf32>
    %270 = vector.shape_cast %269 : vector<8xf32> to vector<8x1xf32>
    %271 = vector.broadcast %270 : vector<8x1xf32> to vector<8x256xf32>
    %272 = arith.cmpf oeq, %268, %271 : vector<8x256xf32>
    %c256_i32_86 = arith.constant 256 : i32
    %273 = vector.shape_cast %208 : vector<1x256xi32> to vector<1x256xi32>
    %274 = vector.broadcast %273 : vector<1x256xi32> to vector<8x256xi32>
    %275 = vector.broadcast %c256_i32_86 : i32 to vector<8x256xi32>
    %276 = arith.select %272, %274, %275 : vector<8x256xi1>, vector<8x256xi32>
    %cst_87 = arith.constant dense<2147483647> : vector<8xi32>
    %277 = vector.multi_reduction <minsi>, %276, %cst_87 [1] : vector<8x256xi32> to vector<8xi32>
    %278 = vector.shape_cast %277 : vector<8xi32> to vector<8x1xi32>
    %279 = vector.broadcast %208 : vector<1x256xi32> to vector<8x256xi32>
    %280 = vector.broadcast %278 : vector<8x1xi32> to vector<8x256xi32>
    %281 = arith.cmpi eq, %279, %280 : vector<8x256xi32>
    %282 = vector.broadcast %cst_68 : f32 to vector<8x256xf32>
    %283 = arith.select %281, %282, %268 : vector<8x256xi1>, vector<8x256xf32>
    %c5_i32_88 = arith.constant 5 : i32
    %cst_89 = arith.constant dense<0xFF800000> : vector<8xf32>
    %284 = vector.multi_reduction <maximumf>, %283, %cst_89 [1] : vector<8x256xf32> to vector<8xf32>
    %285 = vector.shape_cast %284 : vector<8xf32> to vector<8x1xf32>
    %286 = vector.broadcast %285 : vector<8x1xf32> to vector<8x256xf32>
    %287 = arith.cmpf oeq, %283, %286 : vector<8x256xf32>
    %c256_i32_90 = arith.constant 256 : i32
    %288 = vector.shape_cast %208 : vector<1x256xi32> to vector<1x256xi32>
    %289 = vector.broadcast %288 : vector<1x256xi32> to vector<8x256xi32>
    %290 = vector.broadcast %c256_i32_90 : i32 to vector<8x256xi32>
    %291 = arith.select %287, %289, %290 : vector<8x256xi1>, vector<8x256xi32>
    %cst_91 = arith.constant dense<2147483647> : vector<8xi32>
    %292 = vector.multi_reduction <minsi>, %291, %cst_91 [1] : vector<8x256xi32> to vector<8xi32>
    %293 = vector.shape_cast %292 : vector<8xi32> to vector<8x1xi32>
    %294 = vector.broadcast %208 : vector<1x256xi32> to vector<8x256xi32>
    %295 = vector.broadcast %293 : vector<8x1xi32> to vector<8x256xi32>
    %296 = arith.cmpi eq, %294, %295 : vector<8x256xi32>
    %297 = vector.broadcast %cst_68 : f32 to vector<8x256xf32>
    %298 = arith.select %296, %297, %283 : vector<8x256xi1>, vector<8x256xf32>
    %c6_i32_92 = arith.constant 6 : i32
    %cst_93 = arith.constant dense<0xFF800000> : vector<8xf32>
    %299 = vector.multi_reduction <maximumf>, %298, %cst_93 [1] : vector<8x256xf32> to vector<8xf32>
    %300 = vector.shape_cast %299 : vector<8xf32> to vector<8x1xf32>
    %301 = vector.broadcast %300 : vector<8x1xf32> to vector<8x256xf32>
    %302 = arith.cmpf oeq, %298, %301 : vector<8x256xf32>
    %c256_i32_94 = arith.constant 256 : i32
    %303 = vector.shape_cast %208 : vector<1x256xi32> to vector<1x256xi32>
    %304 = vector.broadcast %303 : vector<1x256xi32> to vector<8x256xi32>
    %305 = vector.broadcast %c256_i32_94 : i32 to vector<8x256xi32>
    %306 = arith.select %302, %304, %305 : vector<8x256xi1>, vector<8x256xi32>
    %cst_95 = arith.constant dense<2147483647> : vector<8xi32>
    %307 = vector.multi_reduction <minsi>, %306, %cst_95 [1] : vector<8x256xi32> to vector<8xi32>
    %308 = vector.shape_cast %307 : vector<8xi32> to vector<8x1xi32>
    %309 = vector.broadcast %208 : vector<1x256xi32> to vector<8x256xi32>
    %310 = vector.broadcast %308 : vector<8x1xi32> to vector<8x256xi32>
    %311 = arith.cmpi eq, %309, %310 : vector<8x256xi32>
    %312 = vector.broadcast %cst_68 : f32 to vector<8x256xf32>
    %313 = arith.select %311, %312, %298 : vector<8x256xi1>, vector<8x256xf32>
    %c7_i32_96 = arith.constant 7 : i32
    %cst_97 = arith.constant dense<0xFF800000> : vector<8xf32>
    %314 = vector.multi_reduction <maximumf>, %313, %cst_97 [1] : vector<8x256xf32> to vector<8xf32>
    %315 = vector.shape_cast %314 : vector<8xf32> to vector<8x1xf32>
    %316 = vector.broadcast %315 : vector<8x1xf32> to vector<8x256xf32>
    %317 = arith.cmpf oeq, %313, %316 : vector<8x256xf32>
    %c256_i32_98 = arith.constant 256 : i32
    %318 = vector.shape_cast %208 : vector<1x256xi32> to vector<1x256xi32>
    %319 = vector.broadcast %318 : vector<1x256xi32> to vector<8x256xi32>
    %320 = vector.broadcast %c256_i32_98 : i32 to vector<8x256xi32>
    %321 = arith.select %317, %319, %320 : vector<8x256xi1>, vector<8x256xi32>
    %cst_99 = arith.constant dense<2147483647> : vector<8xi32>
    %322 = vector.multi_reduction <minsi>, %321, %cst_99 [1] : vector<8x256xi32> to vector<8xi32>
    %323 = vector.shape_cast %322 : vector<8xi32> to vector<8x1xi32>
    %324 = vector.broadcast %208 : vector<1x256xi32> to vector<8x256xi32>
    %325 = vector.broadcast %323 : vector<8x1xi32> to vector<8x256xi32>
    %326 = arith.cmpi eq, %324, %325 : vector<8x256xi32>
    %327 = vector.broadcast %cst_68 : f32 to vector<8x256xf32>
    %328 = arith.select %326, %327, %313 : vector<8x256xi1>, vector<8x256xf32>
    %cst_100 = arith.constant 0xFF800000 : f32
    %329 = vector.broadcast %cst_100 : f32 to vector<8x256xf32>
    %330 = arith.cmpf oeq, %328, %329 : vector<8x256xf32>
    %cst_101 = arith.constant 0.000000e+00 : f32
    %331 = vector.broadcast %cst_101 : f32 to vector<8x256xf32>
    %332 = arith.cmpf ogt, %166, %331 : vector<8x256xf32>
    %c0_i32_102 = arith.constant 0 : i32
    %333 = vector.broadcast %c0_i32_102 : i32 to vector<8x128xi32>
    %334 = arith.cmpi eq, %33, %333 : vector<8x128xi32>
    %cst_103 = arith.constant 0.000000e+00 : f32
    %335 = vector.broadcast %207 : f32 to vector<8x128xf32>
    %336 = vector.broadcast %cst_103 : f32 to vector<8x128xf32>
    %337 = arith.select %334, %335, %336 : vector<8x128xi1>, vector<8x128xf32>
    %c1_i32_104 = arith.constant 1 : i32
    %338 = vector.broadcast %c1_i32_104 : i32 to vector<8x128xi32>
    %339 = arith.cmpi eq, %33, %338 : vector<8x128xi32>
    %cst_105 = arith.constant 0.000000e+00 : f32
    %340 = vector.broadcast %cst_105 : f32 to vector<8x256xf32>
    %341 = arith.select %330, %186, %340 : vector<8x256xi1>, vector<8x256xf32>
    %cst_106 = arith.constant dense<0.000000e+00> : vector<8xf32>
    %342 = vector.multi_reduction <add>, %341, %cst_106 [1] : vector<8x256xf32> to vector<8xf32>
    %343 = vector.shape_cast %342 : vector<8xf32> to vector<8x1xf32>
    %cst_107 = arith.constant 0.000000e+00 : f32
    %344 = vector.broadcast %cst_107 : f32 to vector<8x1xf32>
    %345 = arith.select %12, %343, %344 : vector<8x1xi1>, vector<8x1xf32>
    %346 = vector.shape_cast %345 : vector<8x1xf32> to vector<1x8x1xf32>
    %cst_108 = arith.constant dense<0.000000e+00> : vector<1xf32>
    %347 = vector.multi_reduction <add>, %346, %cst_108 [1, 2] : vector<1x8x1xf32> to vector<1xf32>
    %348 = vector.shape_cast %347 : vector<1xf32> to vector<1x1x1xf32>
    %349 = vector.extract %348[0, 0, 0] : f32 from vector<1x1x1xf32>
    %cst_109 = arith.constant 0.000000e+00 : f32
    %350 = vector.broadcast %349 : f32 to vector<8x128xf32>
    %351 = vector.broadcast %cst_109 : f32 to vector<8x128xf32>
    %352 = arith.select %339, %350, %351 : vector<8x128xi1>, vector<8x128xf32>
    %353 = arith.addf %337, %352 : vector<8x128xf32>
    %c2_i32_110 = arith.constant 2 : i32
    %354 = vector.broadcast %c2_i32_110 : i32 to vector<8x128xi32>
    %355 = arith.cmpi eq, %33, %354 : vector<8x128xi32>
    %356 = arith.andi %330, %332 : vector<8x256xi1>
    %357 = arith.extui %356 : vector<8x256xi1> to vector<8x256xi32>
    %358 = arith.sitofp %357 : vector<8x256xi32> to vector<8x256xf32>
    %cst_111 = arith.constant dense<0.000000e+00> : vector<8x128xf32>
    %359 = tpu.matmul %358, %17, %cst_111 {dimension_numbers = #tpu.dot_dimension_numbers<[1], [0], [0], [1], [0, 0, 1, 1], [], []>} : vector<8x256xf32>, vector<256x128xf32>, vector<8x128xf32> -> vector<8x128xf32>
    %cst_112 = arith.constant 0.000000e+00 : f32
    %360 = vector.shape_cast %12 : vector<8x1xi1> to vector<8x1xi1>
    %361 = vector.broadcast %360 : vector<8x1xi1> to vector<8x128xi1>
    %362 = vector.broadcast %cst_112 : f32 to vector<8x128xf32>
    %363 = arith.select %361, %359, %362 : vector<8x128xi1>, vector<8x128xf32>
    %364 = vector.shape_cast %363 : vector<8x128xf32> to vector<1x8x128xf32>
    %cst_113 = arith.constant dense<0.000000e+00> : vector<1xf32>
    %365 = vector.multi_reduction <add>, %364, %cst_113 [1, 2] : vector<1x8x128xf32> to vector<1xf32>
    %366 = vector.shape_cast %365 : vector<1xf32> to vector<1x1x1xf32>
    %367 = vector.extract %366[0, 0, 0] : f32 from vector<1x1x1xf32>
    %cst_114 = arith.constant 0.000000e+00 : f32
    %368 = vector.broadcast %367 : f32 to vector<8x128xf32>
    %369 = vector.broadcast %cst_114 : f32 to vector<8x128xf32>
    %370 = arith.select %355, %368, %369 : vector<8x128xi1>, vector<8x128xf32>
    %371 = arith.addf %353, %370 : vector<8x128xf32>
    %c3_i32_115 = arith.constant 3 : i32
    %372 = vector.broadcast %c3_i32_115 : i32 to vector<8x128xi32>
    %373 = arith.cmpi eq, %33, %372 : vector<8x128xi32>
    %374 = arith.andi %330, %21 : vector<8x256xi1>
    %375 = arith.extui %374 : vector<8x256xi1> to vector<8x256xi32>
    %376 = arith.sitofp %375 : vector<8x256xi32> to vector<8x256xf32>
    %cst_116 = arith.constant dense<0.000000e+00> : vector<8x128xf32>
    %377 = tpu.matmul %376, %17, %cst_116 {dimension_numbers = #tpu.dot_dimension_numbers<[1], [0], [0], [1], [0, 0, 1, 1], [], []>} : vector<8x256xf32>, vector<256x128xf32>, vector<8x128xf32> -> vector<8x128xf32>
    %cst_117 = arith.constant 0.000000e+00 : f32
    %378 = vector.shape_cast %12 : vector<8x1xi1> to vector<8x1xi1>
    %379 = vector.broadcast %378 : vector<8x1xi1> to vector<8x128xi1>
    %380 = vector.broadcast %cst_117 : f32 to vector<8x128xf32>
    %381 = arith.select %379, %377, %380 : vector<8x128xi1>, vector<8x128xf32>
    %382 = vector.shape_cast %381 : vector<8x128xf32> to vector<1x8x128xf32>
    %cst_118 = arith.constant dense<0.000000e+00> : vector<1xf32>
    %383 = vector.multi_reduction <add>, %382, %cst_118 [1, 2] : vector<1x8x128xf32> to vector<1xf32>
    %384 = vector.shape_cast %383 : vector<1xf32> to vector<1x1x1xf32>
    %385 = vector.extract %384[0, 0, 0] : f32 from vector<1x1x1xf32>
    %cst_119 = arith.constant 0.000000e+00 : f32
    %386 = vector.broadcast %385 : f32 to vector<8x128xf32>
    %387 = vector.broadcast %cst_119 : f32 to vector<8x128xf32>
    %388 = arith.select %373, %386, %387 : vector<8x128xi1>, vector<8x128xf32>
    %389 = arith.addf %371, %388 : vector<8x128xf32>
    %c4_i32_120 = arith.constant 4 : i32
    %390 = vector.broadcast %c4_i32_120 : i32 to vector<8x128xi32>
    %391 = arith.cmpi eq, %33, %390 : vector<8x128xi32>
    %392 = arith.ori %332, %21 : vector<8x256xi1>
    %393 = arith.andi %330, %392 : vector<8x256xi1>
    %394 = arith.extui %393 : vector<8x256xi1> to vector<8x256xi32>
    %395 = arith.sitofp %394 : vector<8x256xi32> to vector<8x256xf32>
    %cst_121 = arith.constant dense<0.000000e+00> : vector<8x128xf32>
    %396 = tpu.matmul %395, %17, %cst_121 {dimension_numbers = #tpu.dot_dimension_numbers<[1], [0], [0], [1], [0, 0, 1, 1], [], []>} : vector<8x256xf32>, vector<256x128xf32>, vector<8x128xf32> -> vector<8x128xf32>
    %cst_122 = arith.constant 0.000000e+00 : f32
    %397 = vector.shape_cast %12 : vector<8x1xi1> to vector<8x1xi1>
    %398 = vector.broadcast %397 : vector<8x1xi1> to vector<8x128xi1>
    %399 = vector.broadcast %cst_122 : f32 to vector<8x128xf32>
    %400 = arith.select %398, %396, %399 : vector<8x128xi1>, vector<8x128xf32>
    %401 = vector.shape_cast %400 : vector<8x128xf32> to vector<1x8x128xf32>
    %cst_123 = arith.constant dense<0.000000e+00> : vector<1xf32>
    %402 = vector.multi_reduction <add>, %401, %cst_123 [1, 2] : vector<1x8x128xf32> to vector<1xf32>
    %403 = vector.shape_cast %402 : vector<1xf32> to vector<1x1x1xf32>
    %404 = vector.extract %403[0, 0, 0] : f32 from vector<1x1x1xf32>
    %cst_124 = arith.constant 0.000000e+00 : f32
    %405 = vector.broadcast %404 : f32 to vector<8x128xf32>
    %406 = vector.broadcast %cst_124 : f32 to vector<8x128xf32>
    %407 = arith.select %391, %405, %406 : vector<8x128xi1>, vector<8x128xf32>
    %408 = arith.addf %389, %407 : vector<8x128xf32>
    %c5_i32_125 = arith.constant 5 : i32
    %409 = vector.broadcast %c5_i32_125 : i32 to vector<8x128xi32>
    %410 = arith.cmpi eq, %33, %409 : vector<8x128xi32>
    %411 = arith.extui %332 : vector<8x256xi1> to vector<8x256xi32>
    %412 = arith.sitofp %411 : vector<8x256xi32> to vector<8x256xf32>
    %cst_126 = arith.constant dense<0.000000e+00> : vector<8x128xf32>
    %413 = tpu.matmul %412, %17, %cst_126 {dimension_numbers = #tpu.dot_dimension_numbers<[1], [0], [0], [1], [0, 0, 1, 1], [], []>} : vector<8x256xf32>, vector<256x128xf32>, vector<8x128xf32> -> vector<8x128xf32>
    %cst_127 = arith.constant 0.000000e+00 : f32
    %414 = vector.shape_cast %12 : vector<8x1xi1> to vector<8x1xi1>
    %415 = vector.broadcast %414 : vector<8x1xi1> to vector<8x128xi1>
    %416 = vector.broadcast %cst_127 : f32 to vector<8x128xf32>
    %417 = arith.select %415, %413, %416 : vector<8x128xi1>, vector<8x128xf32>
    %418 = vector.shape_cast %417 : vector<8x128xf32> to vector<1x8x128xf32>
    %cst_128 = arith.constant dense<0.000000e+00> : vector<1xf32>
    %419 = vector.multi_reduction <add>, %418, %cst_128 [1, 2] : vector<1x8x128xf32> to vector<1xf32>
    %420 = vector.shape_cast %419 : vector<1xf32> to vector<1x1x1xf32>
    %421 = vector.extract %420[0, 0, 0] : f32 from vector<1x1x1xf32>
    %cst_129 = arith.constant 0.000000e+00 : f32
    %422 = vector.broadcast %421 : f32 to vector<8x128xf32>
    %423 = vector.broadcast %cst_129 : f32 to vector<8x128xf32>
    %424 = arith.select %410, %422, %423 : vector<8x128xi1>, vector<8x128xf32>
    %425 = arith.addf %408, %424 : vector<8x128xf32>
    %c6_i32_130 = arith.constant 6 : i32
    %426 = vector.broadcast %c6_i32_130 : i32 to vector<8x128xi32>
    %427 = arith.cmpi eq, %33, %426 : vector<8x128xi32>
    %cst_131 = arith.constant 0.000000e+00 : f32
    %428 = vector.broadcast %32 : f32 to vector<8x128xf32>
    %429 = vector.broadcast %cst_131 : f32 to vector<8x128xf32>
    %430 = arith.select %427, %428, %429 : vector<8x128xi1>, vector<8x128xf32>
    %431 = arith.addf %425, %430 : vector<8x128xf32>
    %c0_132 = arith.constant 0 : index
    %c1_133 = arith.constant 1 : index
    %c0_134 = arith.constant 0 : index
    %c0_135 = arith.constant 0 : index
    %432 = vector.load %arg5[%c0_132, %c1_133, %c0_134, %c0_135] : memref<1x2x8x128xf32, #tpu.memory_space<vmem>>, vector<1x1x8x128xf32>
    %433 = vector.shape_cast %432 : vector<1x1x8x128xf32> to vector<8x128xf32>
    %434 = arith.addf %433, %431 : vector<8x128xf32>
    %c0_136 = arith.constant 0 : index
    %c1_137 = arith.constant 1 : index
    %c0_138 = arith.constant 0 : index
    %c0_139 = arith.constant 0 : index
    %435 = vector.load %arg5[%c0_136, %c1_137, %c0_138, %c0_139] : memref<1x2x8x128xf32, #tpu.memory_space<vmem>>, vector<1x1x8x128xf32>
    %436 = vector.shape_cast %435 : vector<1x1x8x128xf32> to vector<8x128xf32>
    %437 = vector.shape_cast %434 : vector<8x128xf32> to vector<1x1x8x128xf32>
    tpu.vector_store %arg5[%c0_136, %c1_137, %c0_138, %c0_139], %437 {strides = array<i32>} : memref<1x2x8x128xf32, #tpu.memory_space<vmem>>, vector<1x1x8x128xf32>,
    return
  }
  func.func @transform_0(%arg0: i32, %arg1: i32) -> (i32, i32, i32) {
    %c1_i32 = arith.constant 1 : i32
    %0 = arith.muli %arg0, %c1_i32 : i32
    %1 = arith.addi %0, %arg1 : i32
    %c0_i32 = arith.constant 0 : i32
    %2 = arith.minsi %1, %c0_i32 : i32
    %c0_i32_0 = arith.constant 0 : i32
    %c0_i32_1 = arith.constant 0 : i32
    %c0_i32_2 = arith.constant 0 : i32
    return %c0_i32_0, %2, %c0_i32_1 : i32, i32, i32
  }
  func.func @transform_1(%arg0: i32, %arg1: i32) -> (i32, i32) {
    %c1_i32 = arith.constant 1 : i32
    %0 = arith.muli %arg0, %c1_i32 : i32
    %1 = arith.addi %0, %arg1 : i32
    %c0_i32 = arith.constant 0 : i32
    %2 = arith.minsi %1, %c0_i32 : i32
    %c0_i32_0 = arith.constant 0 : i32
    %c0_i32_1 = arith.constant 0 : i32
    return %2, %c0_i32_0 : i32, i32
  }
  func.func @transform_2(%arg0: i32, %arg1: i32) -> (i32, i32) {
    %c1_i32 = arith.constant 1 : i32
    %0 = arith.muli %arg0, %c1_i32 : i32
    %1 = arith.addi %0, %arg1 : i32
    %c0_i32 = arith.constant 0 : i32
    %2 = arith.minsi %1, %c0_i32 : i32
    %c0_i32_0 = arith.constant 0 : i32
    %c0_i32_1 = arith.constant 0 : i32
    return %2, %c0_i32_0 : i32, i32
  }
  func.func @transform_3(%arg0: i32, %arg1: i32) -> (i32, i32, i32, i32) {
    %c0_i32 = arith.constant 0 : i32
    %c0_i32_0 = arith.constant 0 : i32
    %c0_i32_1 = arith.constant 0 : i32
    %c0_i32_2 = arith.constant 0 : i32
    return %arg0, %c0_i32, %c0_i32_0, %c0_i32_1 : i32, i32, i32, i32
  }
}

</mosaic_0001>

<bundles_post_ra>
// kernel: tpu_custom_call.1
= control target key start
LH: loop header
LB: loop body
LE: loop exit
PB: predicated region body
PF: predicated region fallthrough
CT: control target
= control target key end

     0   :  { %8 = vsyncpa [#allocation3], 0  ;;  %s2301_s0 = inlined_call_operand.hbm [shape: f32[2,8,256], index: 0, kind: input, shape index: {}]   ;;  %s2302_s1 = inlined_call_operand.hbm [shape: f32[8,256], index: 1, kind: input, shape index: {}]   ;;  %s2303_s2 = inlined_call_operand.hbm [shape: f32[8,256], index: 2, kind: input, shape index: {}]   ;;  %s2304_s3 = inlined_call_operand.hbm [shape: f32[1,2,8,128], index: 3, kind: output, shape index: {}]  }
   0x1   :  { %9 = vsyncpa [#allocation6], 0  ;;  %s41_s14 = sshll.u32 %s2302_s1, 4  ;;  %s42_s14 = int_to_ptr.hbm [resolvable:$true] %s41_s14 }
   0x2   :  { %10 = vsyncpa [#allocation4], 0  ;;  %s1454_s15 = smov [#allocation5]   ;;  %s21_s19 = sshll.u32 %s2301_s0, 4  ;;  %s22_s19 = int_to_ptr.hbm [resolvable:$true] %s21_s19 }
   0x3   :  { %s43_s16 = sshll.u32 %s1454_s15, 4  ;;  %s1455_s20 = smov [#allocation2]   ;;  %s44_s16 = int_to_ptr.vmem [resolvable:$true] %s43_s16 }
   0x4   :  { %46 = dma.hbm_to_vmem [thread:$0]  %s42_s14, 256, %s44_s16, [#allocation6]  }
   0x5   :  { %s23_s21 = sshll.u32 %s1455_s20, 4  ;;  %s1456_s22 = smov 256   ;;  %s24_s21 = int_to_ptr.vmem [resolvable:$true] %s23_s21 }
   0x6   :  { %s1457_s23 = smov 16   ;;  %s58_s1 = sshll.u32 %s2303_s2, 4  ;;  %s59_s1 = int_to_ptr.hbm [resolvable:$true] %s58_s1 }
   0x7   :  { %29 = dma.hbm_to_vmem [thread:$0]  %s22_s19, 512, %s24_s21, [#allocation3], %s1456_s22, %s1456_s22, %s1457_s23  }
   0x8   :  { %s1458_s26 = smov [#allocation7]  }
   0x9   :  { %s60_s27 = sshll.u32 %s1458_s26, 4  ;;  %s61_s27 = int_to_ptr.vmem [resolvable:$true] %s60_s27 }
   0xa   :  { %63 = dma.hbm_to_vmem [thread:$0]  %s59_s1, 256, %s61_s27, [#allocation6]  }
   0xb   :  { %1448 = dma.done.wait [#allocation3], 512  }
   0xc   :  { %1449 = vsyncadd [#allocation3], 4294966784 }
   0xd   :  { %1450 = dma.done.wait [#allocation6], 512  }
   0xe   :  { %1451 = vsyncadd [#allocation6], 4294966784  ;;  %v481_v0 = vld [vmem:[#allocation2 + $0x10] sm:$0xff]  ;;  %v482_v1 = vld [vmem:[#allocation2 + $0x18] sm:$0xff]  ;;  %v102_v41 = vlaneseq  ;;  %s1460_s8 = smov [#allocation8]   ;;  %s1091_s12 = sshll.u32 %s2304_s3, 4  ;;  %s1092_s12 = int_to_ptr.hbm [resolvable:$true] %s1091_s12 }
   0xf   :  { %v483_v2 = vand.u32 2147483647, %v481_v0  ;;  %v484_v3 = vand.u32 2147483647, %v482_v1  ;;  %v1494_v11 = vld [vmem:[#allocation5] sm:$0xff]  ;;  %v1498_v13 = vld [vmem:[#allocation5 + $0x8] sm:$0xff] }
  0x10   :  { %v529_v16 = vmax.f32 %v481_v0, 0.0  ;;  %v531_v17 = vmul.f32 %v481_v0, %v1494_v11  ;;  %v530_v20 = vmax.f32 %v482_v1, 0.0  ;;  %v532_v21 = vmul.f32 %v482_v1, %v1498_v13  ;;  %v1504_v32 = vld [vmem:[#allocation7] sm:$0xff]  ;;  %v1506_v34 = vld [vmem:[#allocation7 + $0x8] sm:$0xff]  ;;  %s1089_s9 = sshll.u32 %s1460_s8, 4  ;;  %s1461_s13 = smov 128   ;;  %s1090_s9 = int_to_ptr.vmem [resolvable:$true] %s1089_s9 }
  0x11   :  { %v485_v4 = vsub.f32 0.0, %v483_v2  ;;  %v486_v5 = vsub.f32 0.0, %v484_v3  ;;  %v1516_v42 = vand.u32 127, %v102_v41  ;;  %s1462_s14 = smov 8  }
  0x12   :  { %v533_v26 = vsub.f32 %v529_v16, %v531_v17  ;;  %v534_v29 = vsub.f32 %v530_v20, %v532_v21 }
  0x13   :  { %v487_v6 = vmul.f32 1.442695, %v485_v4  ;;  %v489_v7 = vmul.f32 1.442695, %v486_v5  ;;  %v1519_v43 = vadd.s32 128, %v1516_v42 }
  0x15   :  { %1320 = vpow2.f32 %v487_v6 }
  0x16   :  { %1322 = vpow2.f32 %v489_v7 }
  0x1b   :  { %v1321_v8 = vpop.eup %1320 }
  0x1c   :  { %v1323_v9 = vpop.eup %1322  ;;  %v1492_v10 = vadd.f32 1.0, %v1321_v8  ;;  %v538_v14 = vmul.f32 -0.5, %v1321_v8  ;;  %v541_v19 = vand.u32 2147483647, %v1321_v8 }
  0x1d   :  { %v1496_v12 = vadd.f32 1.0, %v1323_v9  ;;  %v547_v15 = vmul.f32 -0.5, %v1323_v9  ;;  %v550_v23 = vand.u32 2147483647, %v1323_v9 }
  0x1e   :  { %1324 = vlog2.f32 %v1492_v10  ;;  %v539_v18 = vadd.f32 1.0, %v538_v14  ;;  %vm542_vm0 = vcmp.lt.f32.partialorder %v541_v19, 0.0004427343 }
  0x1f   :  { %1326 = vlog2.f32 %v1496_v12  ;;  %v548_v22 = vadd.f32 1.0, %v547_v15  ;;  %vm551_vm1 = vcmp.lt.f32.partialorder %v550_v23, 0.0004427343 }
  0x20   :  { %v540_v24 = vmul.f32 %v1321_v8, %v539_v18 }
  0x21   :  { %v549_v27 = vmul.f32 %v1323_v9, %v548_v22 }
  0x24   :  { %v1325_v25 = vpop.eup %1324 }
  0x25   :  { %v1327_v28 = vpop.eup %1326  ;;  %v537_v30 = vmul.f32 0.6931472, %v1325_v25 }
  0x26   :  { %v546_v31 = vmul.f32 0.6931472, %v1327_v28 }
  0x27   :  { %v543_v33 = vsel %vm542_vm0, %v540_v24, %v537_v30 }
  0x28   :  { %v552_v35 = vsel %vm551_vm1, %v549_v27, %v546_v31  ;;  %v553_v36 = vadd.f32 %v543_v33, %v533_v26  ;;  %v1543_v26 = vld [vmem:[#allocation2] sm:$0xff]  ;;  %v1545_v27 = vld [vmem:[#allocation2 + $0x8] sm:$0xff] }
  0x29   :  { %v554_v37 = vadd.f32 %v552_v35, %v534_v29  ;;  %v173_v28 = vand.u32 2147483647, %v1543_v26  ;;  %v174_v29 = vand.u32 2147483647, %v1545_v27 }
  0x2a   :  { %v1509_v38 = vmul.f32 %v553_v36, %v1504_v32 }
  0x2b   :  { %v1512_v39 = vmul.f32 %v554_v37, %v1506_v34  ;;  %v175_v30 = vsub.f32 0.0, %v173_v28  ;;  %v176_v31 = vsub.f32 0.0, %v174_v29 }
  0x2d   :  { %v596_v40 = vmax.f32 %v1509_v38, %v1512_v39  ;;  %v177_v33 = vmul.f32 1.442695, %v175_v30  ;;  %v179_v35 = vmul.f32 1.442695, %v176_v31 }
  0x2f   :  { %597 = vmax.xlane.f32.xlu0 %v596_v40  ;;  %1328 = vpow2.f32 %v177_v33 }
  0x30   :  { %1330 = vpow2.f32 %v179_v35 }
  0x35   :  { %v1329_v36 = vpop.eup %1328 }
  0x36   :  { %v1331_v37 = vpop.eup %1330  ;;  %v1549_v40 = vadd.f32 1.0, %v1329_v36 }
  0x37   :  { %v1551_v41 = vadd.f32 1.0, %v1331_v37 }
  0x38   :  { %1332 = vlog2.f32 %v1549_v40 }
  0x39   :  { %1334 = vlog2.f32 %v1551_v41 }
  0x3a   :  { %1336 = vrcp.f32 %v1549_v40 }
  0x3b   :  { %1338 = vrcp.f32 %v1551_v41 }
  0x3c   :  { %1340 = vrcp.f32 %v1492_v10 }
  0x3d   :  { %1342 = vrcp.f32 %v1496_v12 }
  0xa2   :  { %v598_v44 = vpop.xlane.xlu0 %597 }
  0xa3   :  { %vm599_vm2 = vcmp.eq.f32.partialorder %v1509_v38, %v598_v44  ;;  %vm600_vm3 = vcmp.eq.f32.partialorder %v1512_v39, %v598_v44  ;;  %v228_v44 = vmul.f32 -0.5, %v1329_v36 }
  0xa4   :  { %v601_v45 = vsel %vm599_vm2, %v1516_v42, 256  ;;  %v602_v46 = vsel %vm600_vm3, %v1519_v43, 256 }
  0xa5   :  { %vm603_vm4 = vcmp.lt.s32.totalorder %v601_v45, %v602_v46 }
  0xa6   :  { %v604_v47 = vsel %vm603_vm4, %v601_v45, %v602_v46  ;;  %v237_v45 = vmul.f32 -0.5, %v1331_v37  ;;  %v1333_v46 = vpop.eup %1332 }
  0xa7   :  { %v606_v48 = vshra.s32 %v604_v47, 16  ;;  %v605_v50 = vand.u32 65535, %v604_v47  ;;  %v229_v47 = vadd.f32 1.0, %v228_v44 }
  0xa9   :  { %v608_v49 = vcvt.s32.f32 %v606_v48  ;;  %v607_v52 = vcvt.s32.f32 %v605_v50  ;;  %v238_v48 = vadd.f32 1.0, %v237_v45  ;;  %v231_v50 = vand.u32 2147483647, %v1329_v36 }
  0xab   :  { %609 = vmin.xlane.f32.xlu0 %v608_v49  ;;  %vm232_vm1 = vcmp.lt.f32.partialorder %v231_v50, 0.0004427343 }
 0x11e   :  { %v610_v51 = vpop.xlane.xlu0 %609 }
 0x11f   :  { %vm611_vm5 = vcmp.eq.f32.partialorder %v608_v49, %v610_v51  ;;  %v616_v54 = vcvt.f32.s32 %v610_v51  ;;  %v1335_v49 = vpop.eup %1334  ;;  %v240_v51 = vand.u32 2147483647, %v1331_v37 }
 0x120   :  { %v612_v53 = vsel %vm611_vm5, %v607_v52, inf  ;;  %v219_v52 = vmax.f32 %v1543_v26, 0.0 }
 0x121   :  { %613 = vmin.xlane.f32.xlu1 %v612_v53  ;;  %v617_v56 = vshll.u32 %v616_v54, 16  ;;  %v220_v53 = vmax.f32 %v1545_v27, 0.0  ;;  %v222_v54 = vmul.f32 %v1545_v27, %v1498_v13  ;;  %vm241_vm2 = vcmp.lt.f32.partialorder %v240_v51, 0.0004427343 }
 0x194   :  { %v614_v55 = vpop.xlane.xlu1 %613 }
 0x195   :  { %v615_v57 = vcvt.f32.s32 %v614_v55  ;;  %v221_v55 = vmul.f32 %v1543_v26, %v1494_v11 }
 0x197   :  { %v618_v58 = vadd.s32 %v617_v56, %v615_v57  ;;  %v227_v56 = vmul.f32 0.6931472, %v1333_v46  ;;  %v230_v57 = vmul.f32 %v1329_v36, %v229_v47 }
 0x199   :  { %vm619_vm6 = vcmp.eq.s32.totalorder %v1516_v42, %v618_v58  ;;  %vm620_vm7 = vcmp.eq.s32.totalorder %v1519_v43, %v618_v58  ;;  %v236_v58 = vmul.f32 0.6931472, %v1335_v49 }
 0x19a   :  { %v621_v59 = vsel %vm619_vm6, -inf, %v1509_v38  ;;  %v622_v60 = vsel %vm620_vm7, -inf, %v1512_v39 }
 0x19b   :  { %v623_v61 = vmax.f32 %v621_v59, %v622_v60 }
 0x19d   :  { %624 = vmax.xlane.f32.xlu1 %v623_v61  ;;  %v223_v61 = vsub.f32 %v219_v52, %v221_v55 }
 0x210   :  { %v625_v62 = vpop.xlane.xlu1 %624 }
 0x211   :  { %vm626_vm8 = vcmp.eq.f32.partialorder %v621_v59, %v625_v62  ;;  %vm627_vm9 = vcmp.eq.f32.partialorder %v622_v60, %v625_v62  ;;  %v233_v62 = vsel %vm232_vm1, %v230_v57, %v227_v56 }
 0x212   :  { %v628_v63 = vsel %vm626_vm8, %v1516_v42, 256  ;;  %v629_v0 = vsel %vm627_vm9, %v1519_v43, 256 }
 0x213   :  { %vm630_vm10 = vcmp.lt.s32.totalorder %v628_v63, %v629_v0 }
 0x214   :  { %v631_v1 = vsel %vm630_vm10, %v628_v63, %v629_v0 }
 0x215   :  { %v633_v2 = vshra.s32 %v631_v1, 16  ;;  %v632_v4 = vand.u32 65535, %v631_v1  ;;  %v243_v1 = vadd.f32 %v233_v62, %v223_v61 }
 0x217   :  { %v635_v3 = vcvt.s32.f32 %v633_v2  ;;  %v634_v6 = vcvt.s32.f32 %v632_v4  ;;  %v1565_v13 = vmul.f32 %v243_v1, %v1504_v32  ;;  %v169_v4 = vsub.s32 255, %v1516_v42 }
 0x219   :  { %636 = vmin.xlane.f32.xlu2 %v635_v3 }
 0x28c   :  { %v637_v5 = vpop.xlane.xlu2 %636 }
 0x28d   :  { %vm638_vm11 = vcmp.eq.f32.partialorder %v635_v3, %v637_v5  ;;  %v643_v8 = vcvt.f32.s32 %v637_v5  ;;  %v289_v3 = vand.u32 4294967040, %v1565_v13  ;;  %v170_v5 = vsub.s32 255, %v1519_v43 }
 0x28e   :  { %v639_v7 = vsel %vm638_vm11, %v634_v6, inf }
 0x28f   :  { %640 = vmin.xlane.f32.xlu2 %v639_v7  ;;  %v644_v14 = vshll.u32 %v643_v8, 16  ;;  %v291_v6 = vor.u32 %v289_v3, %v169_v4 }
 0x302   :  { %v641_v9 = vpop.xlane.xlu2 %640 }
 0x303   :  { %v642_v15 = vcvt.f32.s32 %v641_v9 }
 0x305   :  { %v645_v16 = vadd.s32 %v644_v14, %v642_v15 }
 0x307   :  { %vm646_vm12 = vcmp.eq.s32.totalorder %v1516_v42, %v645_v16  ;;  %vm647_vm13 = vcmp.eq.s32.totalorder %v1519_v43, %v645_v16 }
 0x308   :  { %v1533_v17 = vsel %vm646_vm12, -inf, %v621_v59  ;;  %v1535_v18 = vsel %vm647_vm13, -inf, %v622_v60  ;;  %v239_v59 = vmul.f32 %v1331_v37, %v238_v48  ;;  %v224_v60 = vsub.f32 %v220_v53, %v222_v54 }
 0x309   :  { %v650_v19 = vmax.f32 %v1533_v17, %v1535_v18 }
 0x30a   :  { %v242_v63 = vsel %vm241_vm2, %v239_v59, %v236_v58 }
 0x30b   :  { %651 = vmax.xlane.f32.xlu0 %v650_v19  ;;  %v244_v0 = vadd.f32 %v242_v63, %v224_v60 }
 0x30d   :  { %v1562_v2 = vmul.f32 %v244_v0, %v1506_v34 }
 0x30f   :  { %v290_v11 = vand.u32 4294967040, %v1562_v2 }
 0x311   :  { %v292_v7 = vor.u32 %v290_v11, %v170_v5 }
 0x313   :  { %vm293_vm3 = vcmp.gt.s32.totalorder %v291_v6, %v292_v7 }
 0x314   :  { %v294_v8 = vsel %vm293_vm3, %v291_v6, %v292_v7 }
 0x315   :  { %v296_v9 = vshra.s32 %v294_v8, 16  ;;  %v295_v30 = vand.u32 65535, %v294_v8 }
 0x317   :  { %v298_v14 = vcvt.s32.f32 %v296_v9 }
 0x37e   :  { %v652_v20 = vpop.xlane.xlu0 %651 }
 0x37f   :  { %vm653_vm14 = vcmp.eq.f32.partialorder %v1533_v17, %v652_v20  ;;  %vm654_vm15 = vcmp.eq.f32.partialorder %v1535_v18, %v652_v20 }
 0x380   :  { %v655_v21 = vsel %vm653_vm14, %v1516_v42, 256  ;;  %v656_v22 = vsel %vm654_vm15, %v1519_v43, 256 }
 0x381   :  { %vm657_vm0 = vcmp.lt.s32.totalorder %v655_v21, %v656_v22 }
 0x382   :  { %v658_v23 = vsel %vm657_vm0, %v655_v21, %v656_v22 }
 0x383   :  { %v660_v24 = vshra.s32 %v658_v23, 16  ;;  %v659_v34 = vand.u32 65535, %v658_v23 }
 0x385   :  { %v662_v25 = vcvt.s32.f32 %v660_v24  ;;  %v661_v16 = vcvt.s32.f32 %v659_v34 }
 0x387   :  { %663 = vmin.xlane.f32.xlu1 %v662_v25 }
 0x38f   :  { %299 = vmax.xlane.f32.xlu1 %v298_v14 }
 0x3fa   :  { %v664_v15 = vpop.xlane.xlu1 %663 }
 0x3fb   :  { %vm665_vm4 = vcmp.eq.f32.partialorder %v662_v25, %v664_v15  ;;  %v670_v19 = vcvt.f32.s32 %v664_v15  ;;  %v297_v25 = vcvt.s32.f32 %v295_v30 }
 0x3fc   :  { %v666_v32 = vsel %vm665_vm4, %v661_v16, inf }
 0x3fd   :  { %667 = vmin.xlane.f32.xlu2 %v666_v32  ;;  %v671_v21 = vshll.u32 %v670_v19, 16 }
 0x402   :  { %v300_v31 = vpop.xlane.xlu1 %299 }
 0x403   :  { %vm301_vm7 = vcmp.eq.f32.partialorder %v298_v14, %v300_v31 }
 0x404   :  { %v302_v33 = vsel %vm301_vm7, %v297_v25, -inf }
 0x470   :  { %v668_v20 = vpop.xlane.xlu2 %667 }
 0x471   :  { %v669_v22 = vcvt.f32.s32 %v668_v20 }
 0x473   :  { %v672_v24 = vadd.s32 %v671_v21, %v669_v22 }
 0x475   :  { %vm673_vm5 = vcmp.eq.s32.totalorder %v1516_v42, %v672_v24  ;;  %vm674_vm6 = vcmp.eq.s32.totalorder %v1519_v43, %v672_v24 }
 0x476   :  { %v675_v28 = vsel %vm673_vm5, -inf, %v1533_v17  ;;  %v676_v29 = vsel %vm674_vm6, -inf, %v1535_v18  ;;  %v306_v17 = vcvt.f32.s32 %v300_v31 }
 0x477   :  { %v677_v23 = vmax.f32 %v675_v28, %v676_v29 }
 0x478   :  { %v307_v47 = vshll.u32 %v306_v17, 16 }
 0x479   :  { %678 = vmax.xlane.f32.xlu0 %v677_v23 }
 0x481   :  { %303 = vmax.xlane.f32.xlu0 %v302_v33 }
 0x4ec   :  { %v679_v35 = vpop.xlane.xlu0 %678 }
 0x4ed   :  { %vm680_vm8 = vcmp.eq.f32.partialorder %v675_v28, %v679_v35  ;;  %vm681_vm9 = vcmp.eq.f32.partialorder %v676_v29, %v679_v35 }
 0x4ee   :  { %v682_v36 = vsel %vm680_vm8, %v1516_v42, 256  ;;  %v683_v37 = vsel %vm681_vm9, %v1519_v43, 256 }
 0x4ef   :  { %vm684_vm10 = vcmp.lt.s32.totalorder %v682_v36, %v683_v37 }
 0x4f0   :  { %v685_v44 = vsel %vm684_vm10, %v682_v36, %v683_v37 }
 0x4f1   :  { %v687_v45 = vshra.s32 %v685_v44, 16  ;;  %v686_v55 = vand.u32 65535, %v685_v44 }
 0x4f3   :  { %v689_v18 = vcvt.s32.f32 %v687_v45  ;;  %v688_v57 = vcvt.s32.f32 %v686_v55 }
 0x4f4   :  { %v304_v46 = vpop.xlane.xlu0 %303 }
 0x4f5   :  { %v305_v48 = vcvt.f32.s32 %v304_v46  ;;  %690 = vmin.xlane.f32.xlu2 %v689_v18 }
 0x4f7   :  { %v308_v49 = vadd.s32 %v307_v47, %v305_v48 }
 0x4f9   :  { %vm309_vm11 = vcmp.eq.s32.totalorder %v291_v6, %v308_v49  ;;  %vm310_vm12 = vcmp.eq.s32.totalorder %v292_v7, %v308_v49 }
 0x4fa   :  { %v311_v50 = vsel %vm309_vm11, 2147483648, %v291_v6  ;;  %v312_v51 = vsel %vm310_vm12, 2147483648, %v292_v7 }
 0x4fb   :  { %vm313_vm13 = vcmp.gt.s32.totalorder %v311_v50, %v312_v51 }
 0x4fc   :  { %v314_v52 = vsel %vm313_vm13, %v311_v50, %v312_v51 }
 0x4fd   :  { %v316_v53 = vshra.s32 %v314_v52, 16  ;;  %v315_v59 = vand.u32 65535, %v314_v52 }
 0x4ff   :  { %v318_v54 = vcvt.s32.f32 %v316_v53  ;;  %v317_v61 = vcvt.s32.f32 %v315_v59 }
 0x501   :  { %319 = vmax.xlane.f32.xlu2 %v318_v54 }
 0x568   :  { %v691_v56 = vpop.xlane.xlu2 %690 }
 0x569   :  { %vm692_vm14 = vcmp.eq.f32.partialorder %v689_v18, %v691_v56  ;;  %v697_v63 = vcvt.f32.s32 %v691_v56 }
 0x56a   :  { %v693_v58 = vsel %vm692_vm14, %v688_v57, inf }
 0x56b   :  { %694 = vmin.xlane.f32.xlu1 %v693_v58  ;;  %v698_v1 = vshll.u32 %v697_v63, 16 }
 0x574   :  { %v320_v60 = vpop.xlane.xlu2 %319 }
 0x575   :  { %vm321_vm15 = vcmp.eq.f32.partialorder %v318_v54, %v320_v60  ;;  %v326_v7 = vcvt.f32.s32 %v320_v60 }
 0x576   :  { %v322_v62 = vsel %vm321_vm15, %v317_v61, -inf }
 0x577   :  { %323 = vmax.xlane.f32.xlu1 %v322_v62  ;;  %v327_v9 = vshll.u32 %v326_v7, 16 }
 0x5de   :  { %v695_v0 = vpop.xlane.xlu1 %694 }
 0x5df   :  { %v696_v11 = vcvt.f32.s32 %v695_v0 }
 0x5e1   :  { %v699_v3 = vadd.s32 %v698_v1, %v696_v11 }
 0x5e3   :  { %vm700_vm0 = vcmp.eq.s32.totalorder %v1516_v42, %v699_v3  ;;  %vm701_vm1 = vcmp.eq.s32.totalorder %v1519_v43, %v699_v3 }
 0x5e4   :  { %v702_v4 = vsel %vm700_vm0, -inf, %v675_v28  ;;  %v703_v5 = vsel %vm701_vm1, -inf, %v676_v29 }
 0x5e5   :  { %v704_v6 = vmax.f32 %v702_v4, %v703_v5 }
 0x5e7   :  { %705 = vmax.xlane.f32.xlu0 %v704_v6 }
 0x5ea   :  { %v324_v8 = vpop.xlane.xlu1 %323 }
 0x5eb   :  { %v325_v14 = vcvt.f32.s32 %v324_v8 }
 0x5ed   :  { %v328_v34 = vadd.s32 %v327_v9, %v325_v14 }
 0x5ef   :  { %vm329_vm2 = vcmp.eq.s32.totalorder %v311_v50, %v328_v34  ;;  %vm330_vm3 = vcmp.eq.s32.totalorder %v312_v51, %v328_v34 }
 0x5f0   :  { %v331_v15 = vsel %vm329_vm2, 2147483648, %v311_v50  ;;  %v332_v16 = vsel %vm330_vm3, 2147483648, %v312_v51 }
 0x5f1   :  { %vm333_vm4 = vcmp.gt.s32.totalorder %v331_v15, %v332_v16 }
 0x5f2   :  { %v334_v32 = vsel %vm333_vm4, %v331_v15, %v332_v16 }
 0x5f3   :  { %v336_v19 = vshra.s32 %v334_v32, 16  ;;  %v335_v23 = vand.u32 65535, %v334_v32 }
 0x5f5   :  { %v338_v20 = vcvt.s32.f32 %v336_v19  ;;  %v337_v25 = vcvt.s32.f32 %v335_v23 }
 0x5f7   :  { %339 = vmax.xlane.f32.xlu0 %v338_v20 }
 0x65a   :  { %v706_v21 = vpop.xlane.xlu0 %705 }
 0x65b   :  { %vm707_vm5 = vcmp.eq.f32.partialorder %v702_v4, %v706_v21  ;;  %vm708_vm6 = vcmp.eq.f32.partialorder %v703_v5, %v706_v21 }
 0x65c   :  { %v709_v22 = vsel %vm707_vm5, %v1516_v42, 256  ;;  %v710_v24 = vsel %vm708_vm6, %v1519_v43, 256 }
 0x65d   :  { %vm711_vm7 = vcmp.lt.s32.totalorder %v709_v22, %v710_v24 }
 0x65e   :  { %v712_v28 = vsel %vm711_vm7, %v709_v22, %v710_v24 }
 0x65f   :  { %v714_v29 = vshra.s32 %v712_v28, 16  ;;  %v713_v35 = vand.u32 65535, %v712_v28 }
 0x661   :  { %v716_v30 = vcvt.s32.f32 %v714_v29  ;;  %v715_v37 = vcvt.s32.f32 %v713_v35 }
 0x663   :  { %717 = vmin.xlane.f32.xlu2 %v716_v30 }
 0x66a   :  { %v340_v31 = vpop.xlane.xlu0 %339 }
 0x66b   :  { %vm341_vm8 = vcmp.eq.f32.partialorder %v338_v20, %v340_v31  ;;  %v346_v17 = vcvt.f32.s32 %v340_v31 }
 0x66c   :  { %v342_v33 = vsel %vm341_vm8, %v337_v25, -inf }
 0x66d   :  { %343 = vmax.xlane.f32.xlu2 %v342_v33  ;;  %v347_v18 = vshll.u32 %v346_v17, 16 }
 0x6d6   :  { %v718_v36 = vpop.xlane.xlu2 %717 }
 0x6d7   :  { %vm719_vm9 = vcmp.eq.f32.partialorder %v716_v30, %v718_v36  ;;  %v724_v53 = vcvt.f32.s32 %v718_v36 }
 0x6d8   :  { %v720_v44 = vsel %vm719_vm9, %v715_v37, inf }
 0x6d9   :  { %721 = vmin.xlane.f32.xlu1 %v720_v44  ;;  %v725_v55 = vshll.u32 %v724_v53, 16 }
 0x6e0   :  { %v344_v45 = vpop.xlane.xlu2 %343 }
 0x6e1   :  { %v345_v46 = vcvt.f32.s32 %v344_v45 }
 0x6e3   :  { %v348_v47 = vadd.s32 %v347_v18, %v345_v46 }
 0x6e5   :  { %vm349_vm10 = vcmp.eq.s32.totalorder %v331_v15, %v348_v47  ;;  %vm350_vm11 = vcmp.eq.s32.totalorder %v332_v16, %v348_v47 }
 0x6e6   :  { %v351_v48 = vsel %vm349_vm10, 2147483648, %v331_v15  ;;  %v352_v49 = vsel %vm350_vm11, 2147483648, %v332_v16 }
 0x6e7   :  { %vm353_vm12 = vcmp.gt.s32.totalorder %v351_v48, %v352_v49 }
 0x6e8   :  { %v354_v50 = vsel %vm353_vm12, %v351_v48, %v352_v49 }
 0x6e9   :  { %v356_v51 = vshra.s32 %v354_v50, 16  ;;  %v355_v61 = vand.u32 65535, %v354_v50 }
 0x6eb   :  { %v358_v52 = vcvt.s32.f32 %v356_v51  ;;  %v357_v63 = vcvt.s32.f32 %v355_v61 }
 0x6ed   :  { %359 = vmax.xlane.f32.xlu1 %v358_v52 }
 0x74c   :  { %v722_v54 = vpop.xlane.xlu1 %721 }
 0x74d   :  { %v723_v56 = vcvt.f32.s32 %v722_v54 }
 0x74f   :  { %v726_v57 = vadd.s32 %v725_v55, %v723_v56 }
 0x751   :  { %vm727_vm13 = vcmp.eq.s32.totalorder %v1516_v42, %v726_v57  ;;  %vm728_vm14 = vcmp.eq.s32.totalorder %v1519_v43, %v726_v57 }
 0x752   :  { %v729_v58 = vsel %vm727_vm13, -inf, %v702_v4  ;;  %v730_v59 = vsel %vm728_vm14, -inf, %v703_v5 }
 0x753   :  { %v731_v60 = vmax.f32 %v729_v58, %v730_v59 }
 0x755   :  { %732 = vmax.xlane.f32.xlu0 %v731_v60 }
 0x760   :  { %v360_v62 = vpop.xlane.xlu1 %359 }
 0x761   :  { %vm361_vm15 = vcmp.eq.f32.partialorder %v358_v52, %v360_v62  ;;  %v366_v5 = vcvt.f32.s32 %v360_v62 }
 0x762   :  { %v362_v0 = vsel %vm361_vm15, %v357_v63, -inf }
 0x763   :  { %363 = vmax.xlane.f32.xlu0 %v362_v0  ;;  %v367_v9 = vshll.u32 %v366_v5, 16 }
 0x7c8   :  { %v733_v1 = vpop.xlane.xlu0 %732 }
 0x7c9   :  { %vm734_vm0 = vcmp.eq.f32.partialorder %v729_v58, %v733_v1  ;;  %vm735_vm1 = vcmp.eq.f32.partialorder %v730_v59, %v733_v1 }
 0x7ca   :  { %v736_v11 = vsel %vm734_vm0, %v1516_v42, 256  ;;  %v737_v3 = vsel %vm735_vm1, %v1519_v43, 256 }
 0x7cb   :  { %vm738_vm2 = vcmp.lt.s32.totalorder %v736_v11, %v737_v3 }
 0x7cc   :  { %v739_v6 = vsel %vm738_vm2, %v736_v11, %v737_v3 }
 0x7cd   :  { %v741_v7 = vshra.s32 %v739_v6, 16  ;;  %v740_v21 = vand.u32 65535, %v739_v6 }
 0x7cf   :  { %v743_v4 = vcvt.s32.f32 %v741_v7  ;;  %v742_v24 = vcvt.s32.f32 %v740_v21 }
 0x7d1   :  { %744 = vmin.xlane.f32.xlu2 %v743_v4 }
 0x7d6   :  { %v364_v8 = vpop.xlane.xlu0 %363 }
 0x7d7   :  { %v365_v14 = vcvt.f32.s32 %v364_v8 }
 0x7d9   :  { %v368_v34 = vadd.s32 %v367_v9, %v365_v14 }
 0x7db   :  { %vm369_vm3 = vcmp.eq.s32.totalorder %v351_v48, %v368_v34  ;;  %vm370_vm4 = vcmp.eq.s32.totalorder %v352_v49, %v368_v34 }
 0x7dc   :  { %v371_v15 = vsel %vm369_vm3, 2147483648, %v351_v48  ;;  %v372_v16 = vsel %vm370_vm4, 2147483648, %v352_v49 }
 0x7dd   :  { %vm373_vm5 = vcmp.gt.s32.totalorder %v371_v15, %v372_v16 }
 0x7de   :  { %v374_v32 = vsel %vm373_vm5, %v371_v15, %v372_v16 }
 0x7df   :  { %v376_v19 = vshra.s32 %v374_v32, 16  ;;  %v375_v29 = vand.u32 65535, %v374_v32 }
 0x7e1   :  { %v378_v20 = vcvt.s32.f32 %v376_v19  ;;  %v377_v23 = vcvt.s32.f32 %v375_v29 }
 0x7e3   :  { %379 = vmax.xlane.f32.xlu2 %v378_v20 }
 0x844   :  { %v745_v22 = vpop.xlane.xlu2 %744 }
 0x845   :  { %vm746_vm6 = vcmp.eq.f32.partialorder %v743_v4, %v745_v22  ;;  %v751_v25 = vcvt.f32.s32 %v745_v22 }
 0x846   :  { %v747_v28 = vsel %vm746_vm6, %v742_v24, inf }
 0x847   :  { %748 = vmin.xlane.f32.xlu1 %v747_v28  ;;  %v752_v35 = vshll.u32 %v751_v25, 16 }
 0x856   :  { %v380_v30 = vpop.xlane.xlu2 %379 }
 0x857   :  { %vm381_vm7 = vcmp.eq.f32.partialorder %v378_v20, %v380_v30  ;;  %v386_v18 = vcvt.f32.s32 %v380_v30 }
 0x858   :  { %v382_v31 = vsel %vm381_vm7, %v377_v23, -inf }
 0x859   :  { %383 = vmax.xlane.f32.xlu1 %v382_v31  ;;  %v387_v47 = vshll.u32 %v386_v18, 16 }
 0x8ba   :  { %v749_v33 = vpop.xlane.xlu1 %748 }
 0x8bb   :  { %v750_v36 = vcvt.f32.s32 %v749_v33 }
 0x8bd   :  { %v753_v37 = vadd.s32 %v752_v35, %v750_v36 }
 0x8bf   :  { %vm754_vm8 = vcmp.eq.s32.totalorder %v1516_v42, %v753_v37  ;;  %vm755_vm9 = vcmp.eq.s32.totalorder %v1519_v43, %v753_v37 }
 0x8c0   :  { %v756_v44 = vsel %vm754_vm8, -inf, %v729_v58  ;;  %v757_v17 = vsel %vm755_vm9, -inf, %v730_v59 }
 0x8c1   :  { %v758_v45 = vmax.f32 %v756_v44, %v757_v17 }
 0x8c3   :  { %759 = vmax.xlane.f32.xlu0 %v758_v45 }
 0x8cc   :  { %v384_v46 = vpop.xlane.xlu1 %383 }
 0x8cd   :  { %v385_v48 = vcvt.f32.s32 %v384_v46 }
 0x8cf   :  { %v388_v49 = vadd.s32 %v387_v47, %v385_v48 }
 0x8d1   :  { %vm389_vm10 = vcmp.eq.s32.totalorder %v371_v15, %v388_v49  ;;  %vm390_vm11 = vcmp.eq.s32.totalorder %v372_v16, %v388_v49 }
 0x8d2   :  { %v391_v50 = vsel %vm389_vm10, 2147483648, %v371_v15  ;;  %v392_v51 = vsel %vm390_vm11, 2147483648, %v372_v16 }
 0x8d3   :  { %vm393_vm12 = vcmp.gt.s32.totalorder %v391_v50, %v392_v51 }
 0x8d4   :  { %v394_v52 = vsel %vm393_vm12, %v391_v50, %v392_v51 }
 0x8d5   :  { %v396_v53 = vshra.s32 %v394_v52, 16  ;;  %v395_v61 = vand.u32 65535, %v394_v52 }
 0x8d7   :  { %v398_v54 = vcvt.s32.f32 %v396_v53  ;;  %v397_v63 = vcvt.s32.f32 %v395_v61 }
 0x8d9   :  { %399 = vmax.xlane.f32.xlu1 %v398_v54 }
 0x936   :  { %v760_v55 = vpop.xlane.xlu0 %759 }
 0x937   :  { %vm761_vm13 = vcmp.eq.f32.partialorder %v756_v44, %v760_v55  ;;  %vm762_vm14 = vcmp.eq.f32.partialorder %v757_v17, %v760_v55 }
 0x938   :  { %v763_v56 = vsel %vm761_vm13, %v1516_v42, 256  ;;  %v764_v57 = vsel %vm762_vm14, %v1519_v43, 256  ;;  %vm104_vm14 = vcmp.eq.s32.totalorder %v1516_v42, 0 }
 0x939   :  { %vm765_vm15 = vcmp.lt.s32.totalorder %v763_v56, %v764_v57 }
 0x93a   :  { %v766_v58 = vsel %vm765_vm15, %v763_v56, %v764_v57  ;;  %v1459_v56 = vmov 1.0  }
 0x93b   :  { %v768_v59 = vshra.s32 %v766_v58, 16  ;;  %v767_v1 = vand.u32 65535, %v766_v58  ;;  %1114 = vmatpush.msk.msra.mxu0 %vm104_vm14, %v1459_v56  ;;  %1131 = vmatpush.msk.msra.mxu1 %vm104_vm14, %v1459_v56 }
 0x93c   :  { %1150 = vmatpush.msk.msra.mxu2 %vm104_vm14, %v1459_v56  ;;  %1167 = vmatpush.msk.msra.mxu3 %vm104_vm14, %v1459_v56 }
 0x93d   :  { %v770_v60 = vcvt.s32.f32 %v768_v59  ;;  %v769_v3 = vcvt.s32.f32 %v767_v1  ;;  %1115 = vmatpush.msk.msra.mxu0 %vm104_vm14, %v1459_v56  ;;  %1132 = vmatpush.msk.msra.mxu1 %vm104_vm14, %v1459_v56  ;;  %v1337_v59 = vpop.eup %1336 }
 0x93e   :  { %1151 = vmatpush.msk.msra.mxu2 %vm104_vm14, %v1459_v56  ;;  %1168 = vmatpush.msk.msra.mxu3 %vm104_vm14, %v1459_v56  ;;  %v1663_v61 = vpop.eup %1338 }
 0x93f   :  { %771 = vmin.xlane.f32.xlu2 %v770_v60  ;;  %1116 = vmatpush.msk.msra.mxu0 %vm104_vm14, %v1459_v56  ;;  %v199_v1 = vmul.f32 %v1663_v61, %v1551_v41 }
 0x940   :  { %1133 = vmatpush.msk.msra.mxu1 %vm104_vm14, %v1459_v56  ;;  %1152 = vmatpush.msk.msra.mxu2 %vm104_vm14, %v1459_v56 }
 0x941   :  { %1169 = vmatpush.msk.msra.mxu3 %vm104_vm14, %v1459_v56  ;;  %1117 = vmatpush.msk.msra.mxu0 %vm104_vm14, %v1459_v56 }
 0x942   :  { %1134 = vmatpush.msk.msra.mxu1 %vm104_vm14, %v1459_v56  ;;  %1153 = vmatpush.msk.msra.mxu2 %vm104_vm14, %v1459_v56 }
 0x943   :  { %1118 = vmatpush.msk.msra.mxu0 %vm104_vm14, %v1459_v56  ;;  %1170 = vmatpush.msk.msra.mxu3 %vm104_vm14, %v1459_v56 }
 0x944   :  { %1135 = vmatpush.msk.msra.mxu1 %vm104_vm14, %v1459_v56  ;;  %1154 = vmatpush.msk.msra.mxu2 %vm104_vm14, %v1459_v56 }
 0x945   :  { %1119 = vmatpush.msk.msra.mxu0 %vm104_vm14, %v1459_v56  ;;  %1171 = vmatpush.msk.msra.mxu3 %vm104_vm14, %v1459_v56 }
 0x946   :  { %1136 = vmatpush.msk.msra.mxu1 %vm104_vm14, %v1459_v56  ;;  %1155 = vmatpush.msk.msra.mxu2 %vm104_vm14, %v1459_v56 }
 0x947   :  { %1120 = vmatpush.msk.msra.mxu0 %vm104_vm14, %v1459_v56  ;;  %1172 = vmatpush.msk.msra.mxu3 %vm104_vm14, %v1459_v56 }
 0x948   :  { %1137 = vmatpush.msk.msra.mxu1 %vm104_vm14, %v1459_v56  ;;  %1156 = vmatpush.msk.msra.mxu2 %vm104_vm14, %v1459_v56 }
 0x949   :  { %1121 = vmatpush.msk.msra.mxu0 %vm104_vm14, %v1459_v56  ;;  %1173 = vmatpush.msk.msra.mxu3 %vm104_vm14, %v1459_v56 }
 0x94a   :  { %1138 = vmatpush.msk.msra.mxu1 %vm104_vm14, %v1459_v56  ;;  %1157 = vmatpush.msk.msra.mxu2 %vm104_vm14, %v1459_v56 }
 0x94b   :  { %1122 = vmatpush.msk.msra.mxu0 %vm104_vm14, %v1459_v56  ;;  %1174 = vmatpush.msk.msra.mxu3 %vm104_vm14, %v1459_v56 }
 0x94c   :  { %v400_v62 = vpop.xlane.xlu1 %399  ;;  %1139 = vmatpush.msk.msra.mxu1 %vm104_vm14, %v1459_v56  ;;  %1158 = vmatpush.msk.msra.mxu2 %vm104_vm14, %v1459_v56 }
 0x94d   :  { %vm401_vm0 = vcmp.eq.f32.partialorder %v398_v54, %v400_v62  ;;  %v406_v7 = vcvt.f32.s32 %v400_v62  ;;  %v184_v62 = vmul.f32 %v1337_v59, %v1549_v40  ;;  %1123 = vmatpush.msk.msra.mxu0 %vm104_vm14, %v1459_v56  ;;  %1175 = vmatpush.msk.msra.mxu3 %vm104_vm14, %v1459_v56 }
 0x94e   :  { %v402_v0 = vsel %vm401_vm0, %v397_v63, -inf  ;;  %vm188_vm0 = vweird.f32 %v1549_v40  ;;  %v192_v63 = vand.u32 2147483647, %v1549_v40  ;;  %1140 = vmatpush.msk.msra.mxu1 %vm104_vm14, %v1459_v56  ;;  %1159 = vmatpush.msk.msra.mxu2 %vm104_vm14, %v1459_v56 }
 0x94f   :  { %403 = vmax.xlane.f32.xlu2 %v402_v0  ;;  %v407_v5 = vshll.u32 %v406_v7, 16  ;;  %v194_v0 = vand.u32 2147483648, %v1549_v40  ;;  %v207_v7 = vand.u32 2147483647, %v1551_v41  ;;  %1124 = vmatpush.msk.msra.mxu0 %vm104_vm14, %v1459_v56 }
 0x950   :  { %1141 = vmatpush.msk.msra.mxu1 %vm104_vm14, %v1459_v56  ;;  %1176 = vmatpush.msk.msra.mxu3 %vm104_vm14, %v1459_v56 }
 0x951   :  { %1160 = vmatpush.msk.msra.mxu2 %vm104_vm14, %v1459_v56  ;;  %1125 = vmatpush.msk.msra.mxu0 %vm104_vm14, %v1459_v56 }
 0x952   :  { %1142 = vmatpush.msk.msra.mxu1 %vm104_vm14, %v1459_v56  ;;  %1177 = vmatpush.msk.msra.mxu3 %vm104_vm14, %v1459_v56 }
 0x953   :  { %1161 = vmatpush.msk.msra.mxu2 %vm104_vm14, %v1459_v56  ;;  %1126 = vmatpush.msk.msra.mxu0 %vm104_vm14, %v1459_v56 }
 0x954   :  { %1143 = vmatpush.msk.msra.mxu1 %vm104_vm14, %v1459_v56  ;;  %1178 = vmatpush.msk.msra.mxu3 %vm104_vm14, %v1459_v56 }
 0x955   :  { %1127 = vmatpush.msk.msra.mxu0 %vm104_vm14, %v1459_v56  ;;  %1162 = vmatpush.msk.msra.mxu2 %vm104_vm14, %v1459_v56 }
 0x956   :  { %1144 = vmatpush.msk.msra.mxu1 %vm104_vm14, %v1459_v56  ;;  %1179 = vmatpush.msk.msra.mxu3 %vm104_vm14, %v1459_v56 }
 0x957   :  { %1128 = vmatpush.msk.msra.mxu0 %vm104_vm14, %v1459_v56  ;;  %1163 = vmatpush.msk.msra.mxu2 %vm104_vm14, %v1459_v56 }
 0x958   :  { %1145 = vmatpush.msk.msra.mxu1 %vm104_vm14, %v1459_v56  ;;  %1180 = vmatpush.msk.msra.mxu3 %vm104_vm14, %v1459_v56 }
 0x959   :  { %1129 = vmatpush.msk.msra.mxu0 %vm104_vm14, %v1459_v56  ;;  %1164 = vmatpush.msk.msra.mxu2 %vm104_vm14, %v1459_v56 }
 0x95a   :  { %1146 = vmatpush.msk.msra.mxu1 %vm104_vm14, %v1459_v56  ;;  %1181 = vmatpush.msk.msra.mxu3 %vm104_vm14, %v1459_v56 }
 0x95b   :  { %1186 = vmatpush.msk.msrb.mxu0 %vm104_vm14, %v1459_v56  ;;  %1165 = vmatpush.msk.msra.mxu2 %vm104_vm14, %v1459_v56 }
 0x95c   :  { %1203 = vmatpush.msk.msrb.mxu1 %vm104_vm14, %v1459_v56  ;;  %1182 = vmatpush.msk.msra.mxu3 %vm104_vm14, %v1459_v56 }
 0x95d   :  { %1187 = vmatpush.msk.msrb.mxu0 %vm104_vm14, %v1459_v56  ;;  %1222 = vmatpush.msk.msrb.mxu2 %vm104_vm14, %v1459_v56 }
 0x95e   :  { %1204 = vmatpush.msk.msrb.mxu1 %vm104_vm14, %v1459_v56  ;;  %1239 = vmatpush.msk.msrb.mxu3 %vm104_vm14, %v1459_v56 }
 0x95f   :  { %1188 = vmatpush.msk.msrb.mxu0 %vm104_vm14, %v1459_v56  ;;  %1223 = vmatpush.msk.msrb.mxu2 %vm104_vm14, %v1459_v56 }
 0x960   :  { %1205 = vmatpush.msk.msrb.mxu1 %vm104_vm14, %v1459_v56  ;;  %1240 = vmatpush.msk.msrb.mxu3 %vm104_vm14, %v1459_v56 }
 0x961   :  { %1189 = vmatpush.msk.msrb.mxu0 %vm104_vm14, %v1459_v56  ;;  %1224 = vmatpush.msk.msrb.mxu2 %vm104_vm14, %v1459_v56 }
 0x962   :  { %1206 = vmatpush.msk.msrb.mxu1 %vm104_vm14, %v1459_v56  ;;  %1241 = vmatpush.msk.msrb.mxu3 %vm104_vm14, %v1459_v56 }
 0x963   :  { %1190 = vmatpush.msk.msrb.mxu0 %vm104_vm14, %v1459_v56  ;;  %1225 = vmatpush.msk.msrb.mxu2 %vm104_vm14, %v1459_v56 }
 0x964   :  { %1207 = vmatpush.msk.msrb.mxu1 %vm104_vm14, %v1459_v56  ;;  %1242 = vmatpush.msk.msrb.mxu3 %vm104_vm14, %v1459_v56 }
 0x965   :  { %1191 = vmatpush.msk.msrb.mxu0 %vm104_vm14, %v1459_v56  ;;  %1226 = vmatpush.msk.msrb.mxu2 %vm104_vm14, %v1459_v56 }
 0x966   :  { %1208 = vmatpush.msk.msrb.mxu1 %vm104_vm14, %v1459_v56  ;;  %1243 = vmatpush.msk.msrb.mxu3 %vm104_vm14, %v1459_v56 }
 0x967   :  { %1192 = vmatpush.msk.msrb.mxu0 %vm104_vm14, %v1459_v56  ;;  %1227 = vmatpush.msk.msrb.mxu2 %vm104_vm14, %v1459_v56 }
 0x968   :  { %1209 = vmatpush.msk.msrb.mxu1 %vm104_vm14, %v1459_v56  ;;  %1244 = vmatpush.msk.msrb.mxu3 %vm104_vm14, %v1459_v56 }
 0x969   :  { %1193 = vmatpush.msk.msrb.mxu0 %vm104_vm14, %v1459_v56  ;;  %1228 = vmatpush.msk.msrb.mxu2 %vm104_vm14, %v1459_v56 }
 0x96a   :  { %1210 = vmatpush.msk.msrb.mxu1 %vm104_vm14, %v1459_v56  ;;  %1245 = vmatpush.msk.msrb.mxu3 %vm104_vm14, %v1459_v56 }
 0x96b   :  { %1194 = vmatpush.msk.msrb.mxu0 %vm104_vm14, %v1459_v56  ;;  %1229 = vmatpush.msk.msrb.mxu2 %vm104_vm14, %v1459_v56 }
 0x96c   :  { %1211 = vmatpush.msk.msrb.mxu1 %vm104_vm14, %v1459_v56  ;;  %1246 = vmatpush.msk.msrb.mxu3 %vm104_vm14, %v1459_v56 }
 0x96d   :  { %1195 = vmatpush.msk.msrb.mxu0 %vm104_vm14, %v1459_v56  ;;  %1230 = vmatpush.msk.msrb.mxu2 %vm104_vm14, %v1459_v56 }
 0x96e   :  { %1212 = vmatpush.msk.msrb.mxu1 %vm104_vm14, %v1459_v56  ;;  %1247 = vmatpush.msk.msrb.mxu3 %vm104_vm14, %v1459_v56 }
 0x96f   :  { %1196 = vmatpush.msk.msrb.mxu0 %vm104_vm14, %v1459_v56  ;;  %1231 = vmatpush.msk.msrb.mxu2 %vm104_vm14, %v1459_v56 }
 0x970   :  { %1213 = vmatpush.msk.msrb.mxu1 %vm104_vm14, %v1459_v56  ;;  %1248 = vmatpush.msk.msrb.mxu3 %vm104_vm14, %v1459_v56 }
 0x971   :  { %1197 = vmatpush.msk.msrb.mxu0 %vm104_vm14, %v1459_v56  ;;  %1232 = vmatpush.msk.msrb.mxu2 %vm104_vm14, %v1459_v56 }
 0x972   :  { %1214 = vmatpush.msk.msrb.mxu1 %vm104_vm14, %v1459_v56  ;;  %1249 = vmatpush.msk.msrb.mxu3 %vm104_vm14, %v1459_v56 }
 0x973   :  { %1198 = vmatpush.msk.msrb.mxu0 %vm104_vm14, %v1459_v56  ;;  %1233 = vmatpush.msk.msrb.mxu2 %vm104_vm14, %v1459_v56 }
 0x974   :  { %1215 = vmatpush.msk.msrb.mxu1 %vm104_vm14, %v1459_v56  ;;  %1250 = vmatpush.msk.msrb.mxu3 %vm104_vm14, %v1459_v56 }
 0x975   :  { %1199 = vmatpush.msk.msrb.mxu0 %vm104_vm14, %v1459_v56  ;;  %1234 = vmatpush.msk.msrb.mxu2 %vm104_vm14, %v1459_v56 }
 0x976   :  { %1216 = vmatpush.msk.msrb.mxu1 %vm104_vm14, %v1459_v56  ;;  %1251 = vmatpush.msk.msrb.mxu3 %vm104_vm14, %v1459_v56 }
 0x977   :  { %1200 = vmatpush.msk.msrb.mxu0 %vm104_vm14, %v1459_v56  ;;  %1235 = vmatpush.msk.msrb.mxu2 %vm104_vm14, %v1459_v56 }
 0x978   :  { %1217 = vmatpush.msk.msrb.mxu1 %vm104_vm14, %v1459_v56  ;;  %1252 = vmatpush.msk.msrb.mxu3 %vm104_vm14, %v1459_v56 }
 0x979   :  { %1201 = vmatpush.msk.msrb.mxu0 %vm104_vm14, %v1459_v56  ;;  %1236 = vmatpush.msk.msrb.mxu2 %vm104_vm14, %v1459_v56 }
 0x97a   :  { %1218 = vmatpush.msk.msrb.mxu1 %vm104_vm14, %v1459_v56  ;;  %1253 = vmatpush.msk.msrb.mxu3 %vm104_vm14, %v1459_v56 }
 0x97b   :  { %1237 = vmatpush.msk.msrb.mxu2 %vm104_vm14, %v1459_v56 }
 0x97c   :  { %1254 = vmatpush.msk.msrb.mxu3 %vm104_vm14, %v1459_v56 }
 0x9b2   :  { %v772_v11 = vpop.xlane.xlu2 %771 }
 0x9b3   :  { %vm773_vm1 = vcmp.eq.f32.partialorder %v770_v60, %v772_v11  ;;  %v778_v19 = vcvt.f32.s32 %v772_v11  ;;  %v185_v11 = vsub.f32 1.0, %v184_v62 }
 0x9b4   :  { %v774_v6 = vsel %vm773_vm1, %v769_v3, inf  ;;  %vm189_vm1 = vweird.f32 %v1337_v59  ;;  %v209_v3 = vand.u32 2147483648, %v1551_v41 }
 0x9b5   :  { %775 = vmin.xlane.f32.xlu0 %v774_v6  ;;  %v779_v21 = vshll.u32 %v778_v19, 16  ;;  %v200_v6 = vsub.f32 1.0, %v199_v1  ;;  %v502_v19 = vand.u32 2147483647, %v1492_v10 }
 0x9c2   :  { %v404_v4 = vpop.xlane.xlu2 %403 }
 0x9c3   :  { %v405_v8 = vcvt.f32.s32 %v404_v4  ;;  %v186_v4 = vmul.f32 %v1337_v59, %v185_v11 }
 0x9c5   :  { %v408_v9 = vadd.s32 %v407_v5, %v405_v8  ;;  %v187_v40 = vadd.f32 %v1337_v59, %v186_v4 }
 0x9c7   :  { %vm409_vm2 = vcmp.eq.s32.totalorder %v391_v50, %v408_v9  ;;  %vm410_vm3 = vcmp.eq.s32.totalorder %v392_v51, %v408_v9  ;;  %v195_v9 = vor.u32 1.1754944e-38, %v194_v0 }
 0x9c8   :  { %v411_v14 = vsel %vm409_vm2, 2147483648, %v391_v50  ;;  %v412_v34 = vsel %vm410_vm3, 2147483648, %v392_v51  ;;  %vm203_vm2 = vweird.f32 %v1551_v41  ;;  %vm204_vm3 = vweird.f32 %v1663_v61 }
 0x9c9   :  { %vm413_vm4 = vcmp.gt.s32.totalorder %v411_v14, %v412_v34 }
 0x9ca   :  { %v414_v15 = vsel %vm413_vm4, %v411_v14, %v412_v34  ;;  %vm1712_vm4 = vmor %vm188_vm0, %vm189_vm1  ;;  %vm503_vm1 = vcmp.eq.f32.partialorder %v502_v19, 8.507059e+37 }
 0x9cb   :  { %v416_v16 = vshra.s32 %v414_v15, 16  ;;  %v415_v23 = vand.u32 65535, %v414_v15  ;;  %v210_v15 = vor.u32 1.1754944e-38, %v209_v3 }
 0x9cd   :  { %v418_v32 = vcvt.s32.f32 %v416_v16  ;;  %v417_v25 = vcvt.s32.f32 %v415_v23  ;;  %v1735_v16 = vpop.eup %1340 }
 0x9cf   :  { %419 = vmax.xlane.f32.xlu1 %v418_v32 }
 0xa28   :  { %v776_v20 = vpop.xlane.xlu0 %775 }
 0xa29   :  { %v777_v22 = vcvt.f32.s32 %v776_v20  ;;  %v1343_v20 = vpop.eup %1342 }
 0xa2b   :  { %v780_v24 = vadd.s32 %v779_v21, %v777_v22  ;;  %v191_v21 = vsel %vm1712_vm4, %v1337_v59, %v187_v40  ;;  %v494_v22 = vmul.f32 %v1735_v16, %v1492_v10 }
 0xa2d   :  { %vm781_vm5 = vcmp.eq.s32.totalorder %v1516_v42, %v780_v24  ;;  %vm782_vm6 = vcmp.eq.s32.totalorder %v1519_v43, %v780_v24  ;;  %v504_v24 = vand.u32 2147483648, %v1492_v10 }
 0xa2e   :  { %v1591_v28 = vsel %vm781_vm5, -inf, %v756_v44  ;;  %v1593_v29 = vsel %vm782_vm6, -inf, %v757_v17  ;;  %vm1716_vm5 = vcmp.eq.f32.partialorder %v192_v63, 8.507059e+37  ;;  %vm1729_vm6 = vmor %vm203_vm2, %vm204_vm3 }
 0xa2f   :  { %v785_v30 = vmax.f32 %v1591_v28, %v1593_v29 }
 0xa31   :  { %786 = vmax.xlane.f32.xlu0 %v785_v30  ;;  %v196_v30 = vsel %vm1716_vm5, %v195_v9, %v191_v21 }
 0xa42   :  { %v420_v31 = vpop.xlane.xlu1 %419 }
 0xa43   :  { %vm421_vm7 = vcmp.eq.f32.partialorder %v418_v32, %v420_v31  ;;  %v426_v18 = vcvt.f32.s32 %v420_v31  ;;  %v509_v31 = vmul.f32 %v1343_v20, %v1496_v12 }
 0xa44   :  { %v422_v33 = vsel %vm421_vm7, %v417_v25, -inf  ;;  %vm213_vm7 = vcmp.ge.f32.partialorder %v1543_v26, 0.0  ;;  %v519_v25 = vand.u32 2147483648, %v1496_v12 }
 0xa45   :  { %423 = vmax.xlane.f32.xlu0 %v422_v33  ;;  %v427_v47 = vshll.u32 %v426_v18, 16 }
 0xaa4   :  { %v787_v35 = vpop.xlane.xlu0 %786 }
 0xaa5   :  { %vm788_vm8 = vcmp.eq.f32.partialorder %v1591_v28, %v787_v35  ;;  %vm789_vm9 = vcmp.eq.f32.partialorder %v1593_v29, %v787_v35  ;;  %v215_v35 = vsub.f32 1.0, %v196_v30 }
 0xaa6   :  { %v790_v36 = vsel %vm788_vm8, %v1516_v42, 256  ;;  %v791_v37 = vsel %vm789_vm9, %v1519_v43, 256  ;;  %vm214_vm8 = vcmp.ge.f32.partialorder %v1545_v27, 0.0  ;;  %vm1744_vm9 = vcmp.eq.f32.partialorder %v207_v7, 8.507059e+37  ;;  %v1895_v7 = vld [vmem:[#allocation2 + $0x18] sm:$0xff] }
 0xaa7   :  { %vm792_vm10 = vcmp.lt.s32.totalorder %v790_v36, %v791_v37  ;;  %vm524_vm5 = vcmp.ge.f32.partialorder %v1895_v7, 0.0 }
 0xaa8   :  { %v793_v44 = vsel %vm792_vm10, %v790_v36, %v791_v37  ;;  %vm498_vm10 = vweird.f32 %v1492_v10  ;;  %v495_v36 = vsub.f32 1.0, %v494_v22 }
 0xaa9   :  { %v795_v17 = vshra.s32 %v793_v44, 16  ;;  %v794_v55 = vand.u32 65535, %v793_v44  ;;  %v510_v44 = vsub.f32 1.0, %v509_v31 }
 0xaaa   :  { %v496_v18 = vmul.f32 %v1735_v16, %v495_v36 }
 0xaab   :  { %v797_v45 = vcvt.s32.f32 %v795_v17  ;;  %v796_v58 = vcvt.s32.f32 %v794_v55  ;;  %v517_v17 = vand.u32 2147483647, %v1496_v12 }
 0xaad   :  { %798 = vmin.xlane.f32.xlu2 %v797_v45  ;;  %vm518_vm2 = vcmp.eq.f32.partialorder %v517_v17, 8.507059e+37 }
 0xab8   :  { %v424_v46 = vpop.xlane.xlu0 %423 }
 0xab9   :  { %v425_v48 = vcvt.f32.s32 %v424_v46 }
 0xabb   :  { %v428_v49 = vadd.s32 %v427_v47, %v425_v48  ;;  %v511_v47 = vmul.f32 %v1343_v20, %v510_v44  ;;  %v497_v48 = vadd.f32 %v1735_v16, %v496_v18 }
 0xabd   :  { %vm429_vm11 = vcmp.eq.s32.totalorder %v411_v14, %v428_v49  ;;  %vm430_vm12 = vcmp.eq.s32.totalorder %v412_v34, %v428_v49  ;;  %v505_v49 = vor.u32 1.1754944e-38, %v504_v24  ;;  %v512_v55 = vadd.f32 %v1343_v20, %v511_v47 }
 0xabe   :  { %v1601_v50 = vsel %vm429_vm11, 2147483648, %v411_v14  ;;  %v1603_v51 = vsel %vm430_vm12, 2147483648, %v412_v34  ;;  %v201_v14 = vmul.f32 %v1663_v61, %v200_v6  ;;  %vm513_vm11 = vweird.f32 %v1496_v12  ;;  %v1846_v12 = vld [vmem:[#allocation5] sm:$0xff]  ;;  %v1892_v6 = vld [vmem:[#allocation2 + $0x10] sm:$0xff] }
 0xabf   :  { %vm433_vm13 = vcmp.gt.s32.totalorder %v1601_v50, %v1603_v51  ;;  %vm499_vm12 = vweird.f32 %v1735_v16  ;;  %vm523_vm4 = vcmp.ge.f32.partialorder %v1892_v6, 0.0 }
 0xac0   :  { %v1609_v52 = vsel %vm433_vm13, %v1601_v50, %v1603_v51  ;;  %v202_v41 = vadd.f32 %v1663_v61, %v201_v14  ;;  %vm514_vm13 = vweird.f32 %v1343_v20 }
 0xac1   :  { %v436_v53 = vshra.s32 %v1609_v52, 16  ;;  %vm1830_vm0 = vmor %vm513_vm11, %vm514_vm13  ;;  %vm815_vm11 = vcmp.gt.f32.partialorder %v1895_v7, 0.0 }
 0xac2   :  { %v206_v23 = vsel %vm1729_vm6, %v1663_v61, %v202_v41  ;;  %v435_v61 = vand.u32 65535, %v1609_v52  ;;  %v516_v62 = vsel %vm1830_vm0, %v1343_v20, %v512_v55  ;;  %vm110_vm6 = vcmp.gt.f32.partialorder %v1846_v12, 0.0 }
 0xac3   :  { %v1612_v54 = vcvt.s32.f32 %v436_v53  ;;  %v211_v33 = vsel %vm1744_vm9, %v210_v15, %v206_v23  ;;  %v520_v53 = vor.u32 1.1754944e-38, %v519_v25  ;;  %1130 = vmatmul.msk.f32.vlgmr.msra.gmra.mxu0 %vm110_vm6, %v1459_v56 }
 0xac4   :  { %v216_v37 = vsub.f32 1.0, %v211_v33  ;;  %v437_v1 = vcvt.s32.f32 %v435_v61  ;;  %1258 = vmatpush.msk.msra.mxu0 %vm104_vm14, %v1459_v56 }
 0xac5   :  { %439 = vmax.xlane.f32.xlu2 %v1612_v54  ;;  %v521_v0 = vsel %vm518_vm2, %v520_v53, %v516_v62 }
 0xac6   :  { %v1810_v46 = vsel %vm214_vm8, %v211_v33, %v216_v37  ;;  %v526_v3 = vsub.f32 1.0, %v521_v0  ;;  %1259 = vmatpush.msk.msra.mxu0 %vm104_vm14, %v1459_v56  ;;  %vm814_vm8 = vcmp.gt.f32.partialorder %v1892_v6, 0.0 }
 0xac8   :  { %v1915_v5 = vsel %vm524_vm5, %v521_v0, %v526_v3  ;;  %1260 = vmatpush.msk.msra.mxu0 %vm104_vm14, %v1459_v56 }
 0xaca   :  { %1261 = vmatpush.msk.msra.mxu0 %vm104_vm14, %v1459_v56 }
 0xacc   :  { %1262 = vmatpush.msk.msra.mxu0 %vm104_vm14, %v1459_v56 }
 0xace   :  { %1263 = vmatpush.msk.msra.mxu0 %vm104_vm14, %v1459_v56 }
 0xad0   :  { %1264 = vmatpush.msk.msra.mxu0 %vm104_vm14, %v1459_v56 }
 0xad2   :  { %1265 = vmatpush.msk.msra.mxu0 %vm104_vm14, %v1459_v56 }
 0xad4   :  { %1266 = vmatpush.msk.msra.mxu0 %vm104_vm14, %v1459_v56 }
 0xad6   :  { %1267 = vmatpush.msk.msra.mxu0 %vm104_vm14, %v1459_v56 }
 0xad8   :  { %1268 = vmatpush.msk.msra.mxu0 %vm104_vm14, %v1459_v56 }
 0xada   :  { %1269 = vmatpush.msk.msra.mxu0 %vm104_vm14, %v1459_v56 }
 0xadc   :  { %1270 = vmatpush.msk.msra.mxu0 %vm104_vm14, %v1459_v56 }
 0xade   :  { %1271 = vmatpush.msk.msra.mxu0 %vm104_vm14, %v1459_v56 }
 0xae0   :  { %1272 = vmatpush.msk.msra.mxu0 %vm104_vm14, %v1459_v56 }
 0xae2   :  { %1273 = vmatpush.msk.msra.mxu0 %vm104_vm14, %v1459_v56 }
 0xb20   :  { %v1642_v57 = vpop.xlane.xlu2 %798 }
 0xb21   :  { %vm800_vm15 = vcmp.eq.f32.partialorder %v797_v45, %v1642_v57  ;;  %v1799_v45 = vsel %vm213_vm7, %v196_v30, %v215_v35  ;;  %v805_v41 = vcvt.f32.s32 %v1642_v57 }
 0xb22   :  { %v801_v60 = vsel %vm800_vm15, %v796_v58, inf  ;;  %vm1814_vm15 = vmor %vm498_vm10, %vm499_vm12  ;;  %v247_v27 = vadd.f32 %v1810_v46, %v1799_v45  ;;  %v1848_v58 = vld [vmem:[#allocation5 + $0x8] sm:$0xff]  ;;  %v250_v9 = vmul.f32 %v1846_v12, %v1799_v45 }
 0xb23   :  { %802 = vmin.xlane.f32.xlu1 %v801_v60  ;;  %v107_v59 = vadd.f32 %v1848_v58, %v1846_v12  ;;  %v501_v60 = vsel %vm1814_vm15, %v1735_v16, %v497_v48  ;;  %v251_v14 = vmul.f32 %v1848_v58, %v1810_v46  ;;  %vm111_vm7 = vcmp.gt.f32.partialorder %v1848_v58, 0.0 }
 0xb24   :  { %248 = vadd.xlane.f32.xlu2 %v247_v27  ;;  %v506_v63 = vsel %vm503_vm1, %v505_v49, %v501_v60  ;;  %1147 = vmatmul.msk.f32.vlgmr.msra.gmra.mxu1 %vm111_vm7, %v1459_v56  ;;  %v561_v15 = vmul.f32 %v1848_v58, %v1915_v5  ;;  %v806_v19 = vshll.u32 %v805_v41, 16 }
 0xb25   :  { %v525_v11 = vsub.f32 1.0, %v506_v63  ;;  %v252_v40 = vadd.f32 %v251_v14, %v250_v9  ;;  %1275 = vmatpush.msk.msra.mxu1 %vm104_vm14, %v1459_v56 }
 0xb27   :  { %1276 = vmatpush.msk.msra.mxu1 %vm104_vm14, %v1459_v56 }
 0xb29   :  { %1277 = vmatpush.msk.msra.mxu1 %vm104_vm14, %v1459_v56 }
 0xb2b   :  { %108 = vadd.xlane.f32.xlu1 %v107_v59  ;;  %1278 = vmatpush.msk.msra.mxu1 %vm104_vm14, %v1459_v56 }
 0xb2d   :  { %1279 = vmatpush.msk.msra.mxu1 %vm104_vm14, %v1459_v56 }
 0xb2f   :  { %1280 = vmatpush.msk.msra.mxu1 %vm104_vm14, %v1459_v56 }
 0xb31   :  { %1281 = vmatpush.msk.msra.mxu1 %vm104_vm14, %v1459_v56 }
 0xb33   :  { %253 = vadd.xlane.f32.xlu1 %v252_v40  ;;  %1282 = vmatpush.msk.msra.mxu1 %vm104_vm14, %v1459_v56 }
 0xb35   :  { %1283 = vmatpush.msk.msra.mxu1 %vm104_vm14, %v1459_v56 }
 0xb37   :  { %1284 = vmatpush.msk.msra.mxu1 %vm104_vm14, %v1459_v56 }
 0xb38   :  { %v1876_v52 = vpop.xlane.xlu2 %439 }
 0xb39   :  { %vm441_vm3 = vcmp.eq.f32.partialorder %v1612_v54, %v1876_v52  ;;  %v1913_v54 = vsel %vm523_vm4, %v506_v63, %v525_v11  ;;  %1285 = vmatpush.msk.msra.mxu1 %vm104_vm14, %v1459_v56  ;;  %vm959_vm4 = vmor %vm815_vm11, %vm111_vm7 }
 0xb3a   :  { %v442_v4 = vsel %vm441_vm3, %v437_v1, -inf  ;;  %v557_v8 = vadd.f32 %v1915_v5, %v1913_v54  ;;  %v560_v34 = vmul.f32 %v1846_v12, %v1913_v54  ;;  %vm958_vm3 = vmor %vm814_vm8, %vm110_vm6 }
 0xb3b   :  { %443 = vmax.xlane.f32.xlu0 %v442_v4  ;;  %1286 = vmatpush.msk.msra.mxu1 %vm104_vm14, %v1459_v56 }
 0xb3c   :  { %v562_v16 = vadd.f32 %v561_v15, %v560_v34 }
 0xb3d   :  { %1287 = vmatpush.msk.msra.mxu1 %vm104_vm14, %v1459_v56 }
 0xb3e   :  { %563 = vadd.xlane.f32.xlu2 %v562_v16 }
 0xb3f   :  { %1288 = vmatpush.msk.msra.mxu1 %vm104_vm14, %v1459_v56 }
 0xb40   :  { %v133_v45 = vpop.f32.mrf.mxu0 }
 0xb41   :  { %1289 = vmatpush.msk.msra.mxu1 %vm104_vm14, %v1459_v56 }
 0xb43   :  { %558 = vadd.xlane.f32.xlu0 %v557_v8  ;;  %1290 = vmatpush.msk.msra.mxu1 %vm104_vm14, %v1459_v56 }
 0xb96   :  { %v803_v32 = vpop.xlane.xlu1 %802 }
 0xb97   :  { %v804_v20 = vcvt.f32.s32 %v803_v32  ;;  %v249_v36 = vpop.xlane.xlu2 %248 }
 0xb99   :  { %v807_v21 = vadd.s32 %v806_v19, %v804_v20 }
 0xb9b   :  { %vm808_vm9 = vcmp.eq.s32.totalorder %v1516_v42, %v807_v21  ;;  %vm809_vm10 = vcmp.eq.s32.totalorder %v1519_v43, %v807_v21 }
 0xb9c   :  { %v810_v22 = vsel %vm808_vm9, -inf, %v1591_v28  ;;  %v811_v24 = vsel %vm809_vm10, -inf, %v1593_v29 }
 0xb9d   :  { %vm812_vm12 = vcmp.eq.f32.partialorder %v810_v22, -inf  ;;  %vm813_vm13 = vcmp.eq.f32.partialorder %v811_v24, -inf }
 0xb9e   :  { %vm838_vm15 = vmand %vm812_vm12, %vm814_vm8  ;;  %v818_v57 = vsel %vm812_vm12, %v1509_v38, 0.0  ;;  %v819_v30 = vsel %vm813_vm13, %v1512_v39, 0.0  ;;  %v446_v38 = vcvt.f32.s32 %v1876_v52  ;;  %v109_v37 = vpop.xlane.xlu1 %108 }
 0xb9f   :  { %1166 = vmatmul.msk.f32.vlgmr.msra.gmra.mxu2 %vm838_vm15, %v1459_v56  ;;  %vm839_vm0 = vmand %vm813_vm13, %vm815_vm11  ;;  %v820_v43 = vadd.f32 %v819_v30, %v818_v57  ;;  %v257_v44 = vadd.f32 %v249_v36, %v109_v37 }
 0xba0   :  { %1183 = vmatmul.msk.f32.vlgmr.msra.gmra.mxu3 %vm839_vm0, %v1459_v56  ;;  %vm898_vm1 = vmand %vm812_vm12, %vm110_vm6  ;;  %v447_v28 = vshll.u32 %v446_v38, 16  ;;  %vm276_vm0 = vcmask 7168  }
 0xba1   :  { %1202 = vmatmul.msk.f32.vlgmr.msrb.gmra.mxu0 %vm898_vm1, %v1459_v56  ;;  %vm899_vm2 = vmand %vm813_vm13, %vm111_vm7  ;;  %821 = vadd.xlane.f32.xlu1 %v820_v43  ;;  %v258_v17 = vadd.f32 1.0, %v257_v44  ;;  %v153_v18 = vpop.f32.mrf.mxu1 }
 0xba2   :  { %1219 = vmatmul.msk.f32.vlgmr.msrb.gmra.mxu1 %vm899_vm2, %v1459_v56  ;;  %vm960_vm5 = vmand %vm812_vm12, %vm958_vm3  ;;  %v154_v26 = vadd.f32 %v153_v18, %v133_v45 }
 0xba3   :  { %vm961_vm9 = vmand %vm813_vm13, %vm959_vm4  ;;  %1344 = vrcp.f32 %v258_v17 }
 0xba4   :  { %159 = vadd.xlane.f32.xlu2 %v154_v26 }
 0xba7   :  { %1238 = vmatmul.msk.f32.vlgmr.msrb.gmra.mxu2 %vm960_vm5, %v1459_v56  ;;  %vm457_vm5 = vcmp.eq.s32.totalorder %v1516_v42, 1 }
 0xba8   :  { %1255 = vmatmul.msk.f32.vlgmr.msrb.gmra.mxu3 %vm961_vm9, %v1459_v56  ;;  %vm837_vm9 = vcmp.eq.s32.totalorder %v1516_v42, 2 }
 0xba9   :  { %1274 = vmatmul.msk.f32.vlgmr.msra.gmra.mxu0 %vm814_vm8, %v1459_v56  ;;  %v1345_v46 = vpop.eup %1344 }
 0xbaa   :  { %1291 = vmatmul.msk.f32.vlgmr.msra.gmra.mxu1 %vm815_vm11, %v1459_v56  ;;  %vm264_vm11 = vweird.f32 %v258_v17  ;;  %vm265_vm12 = vweird.f32 %v1345_v46 }
 0xbab   :  { %vm266_vm13 = vmor %vm264_vm11, %vm265_vm12 }
 0xbae   :  { %v444_v39 = vpop.xlane.xlu0 %443 }
 0xbaf   :  { %v445_v29 = vcvt.f32.s32 %v444_v39 }
 0xbb1   :  { %v448_v23 = vadd.s32 %v447_v28, %v445_v29  ;;  %v564_v11 = vpop.xlane.xlu2 %563 }
 0xbb2   :  { %v565_v3 = vmul.f32 2.0, %v564_v11 }
 0xbb3   :  { %vm449_vm6 = vcmp.eq.s32.totalorder %v1601_v50, %v448_v23  ;;  %vm450_vm7 = vcmp.eq.s32.totalorder %v1603_v51, %v448_v23 }
 0xbb4   :  { %v451_v31 = vsel %vm449_vm6, 2147483648, %v1601_v50  ;;  %v452_v25 = vsel %vm450_vm7, 2147483648, %v1603_v51  ;;  %v260_v50 = vmul.f32 %v1345_v46, %v258_v17  ;;  %v254_v51 = vpop.xlane.xlu1 %253  ;;  %v566_v7 = vadd.f32 1.0, %v565_v3 }
 0xbb5   :  { %vm453_vm10 = vcmp.eq.s32.totalorder %v451_v31, 2147483648  ;;  %vm454_vm8 = vcmp.eq.s32.totalorder %v452_v25, 2147483648  ;;  %v255_v47 = vmul.f32 2.0, %v254_v51  ;;  %vm897_vm6 = vcmp.eq.s32.totalorder %v1516_v42, 3 }
 0xbb6   :  { %v458_v33 = vsel %vm453_vm10, %v1565_v13, 0.0  ;;  %v459_v56 = vsel %vm454_vm8, %v1562_v2, 0.0  ;;  %v261_v27 = vsub.f32 1.0, %v260_v50  ;;  %v268_v13 = vand.u32 2147483647, %v258_v17  ;;  %v559_v55 = vpop.xlane.xlu0 %558 }
 0xbb7   :  { %v460_v35 = vadd.f32 %v459_v56, %v458_v33  ;;  %v270_v2 = vand.u32 2147483648, %v258_v17  ;;  %v256_v10 = vadd.f32 1.0, %v255_v47  ;;  %v567_v59 = vadd.f32 %v559_v55, %v109_v37 }
 0xbb8   :  { %v262_v48 = vmul.f32 %v1345_v46, %v261_v27  ;;  %vm269_vm15 = vcmp.eq.f32.partialorder %v268_v13, 8.507059e+37  ;;  %vm957_vm7 = vcmp.eq.s32.totalorder %v1516_v42, 4  ;;  %vm1077_vm10 = vcmp.eq.s32.totalorder %v1516_v42, 6 }
 0xbb9   :  { %461 = vadd.xlane.f32.xlu0 %v460_v35  ;;  %v271_v49 = vor.u32 1.1754944e-38, %v270_v2  ;;  %v568_v62 = vadd.f32 1.0, %v567_v59 }
 0xbba   :  { %v263_v53 = vadd.f32 %v1345_v46, %v262_v48 }
 0xbbb   :  { %1346 = vrcp.f32 %v568_v62  ;;  %v580_v4 = vand.u32 2147483648, %v568_v62  ;;  %vm574_vm1 = vweird.f32 %v568_v62  ;;  %v578_v5 = vand.u32 2147483647, %v568_v62 }
 0xbbc   :  { %v267_v12 = vsel %vm266_vm13, %v1345_v46, %v263_v53 }
 0xbbd   :  { %v272_v58 = vsel %vm269_vm15, %v271_v49, %v267_v12  ;;  %v581_v8 = vor.u32 1.1754944e-38, %v580_v4  ;;  %vm579_vm4 = vcmp.eq.f32.partialorder %v578_v5, 8.507059e+37 }
 0xbbe   :  { %v273_v60 = vmul.f32 %v272_v58, %v256_v10 }
 0xbc0   :  { %v274_v61 = vsub.f32 1.0, %v273_v60 }
 0xbc1   :  { %v1347_v0 = vpop.eup %1346 }
 0xbc2   :  { %v277_v63 = vsel %vm276_vm0, %v274_v61, 0.0  ;;  %v570_v52 = vmul.f32 %v1347_v0, %v568_v62  ;;  %vm575_vm2 = vweird.f32 %v1347_v0 }
 0xbc3   :  { %278 = vadd.xlane.f32.xlu0 %v277_v63  ;;  %vm576_vm3 = vmor %vm574_vm1, %vm575_vm2 }
 0xbc4   :  { %v571_v1 = vsub.f32 1.0, %v570_v52 }
 0xbc6   :  { %v572_v6 = vmul.f32 %v1347_v0, %v571_v1 }
 0xbc8   :  { %v573_v54 = vadd.f32 %v1347_v0, %v572_v6 }
 0xbca   :  { %v577_v9 = vsel %vm576_vm3, %v1347_v0, %v573_v54 }
 0xbcb   :  { %v582_v14 = vsel %vm579_vm4, %v581_v8, %v577_v9 }
 0xbcc   :  { %v583_v40 = vmul.f32 %v582_v14, %v566_v7 }
 0xbce   :  { %v584_v34 = vsub.f32 1.0, %v583_v40 }
 0xbd0   :  { %v586_v15 = vsel %vm276_vm0, %v584_v34, 0.0 }
 0xbd1   :  { %587 = vadd.xlane.f32.xlu2 %v586_v15 }
 0xc14   :  { %v822_v16 = vpop.xlane.xlu1 %821 }
 0xc15   :  { %v824_v41 = vsel %vm276_vm0, %v822_v16, 0.0 }
 0xc16   :  { %825 = vadd.xlane.f32.xlu0 %v824_v41 }
 0xc17   :  { %v160_v25 = vpop.xlane.xlu2 %159 }
 0xc18   :  { %v161_v56 = vrot.slane %v160_v25, 4 }
 0xc1a   :  { %v162_v36 = vadd.f32 %v161_v56, %v160_v25 }
 0xc1c   :  { %v163_v44 = vrot.slane %v162_v36, 2 }
 0xc1e   :  { %v921_v32 = vpop.f32.mrf.mxu0  ;;  %v164_v17 = vadd.f32 %v163_v44, %v162_v36 }
 0xc1f   :  { %v941_v19 = vpop.f32.mrf.mxu1 }
 0xc20   :  { %v942_v20 = vadd.f32 %v941_v19, %v921_v32  ;;  %v165_v18 = vrot.slane %v164_v17, 1 }
 0xc22   :  { %945 = vadd.xlane.f32.xlu2 %v942_v20  ;;  %v861_v21 = vpop.f32.mrf.mxu2  ;;  %v166_v26 = vadd.f32 %v165_v18, %v164_v17 }
 0xc23   :  { %v881_v22 = vpop.f32.mrf.mxu3 }
 0xc24   :  { %v882_v39 = vadd.f32 %v881_v22, %v861_v21  ;;  %1292 = vpush %v166_v26 }
 0xc26   :  { %v1041_v28 = vpop.f32.mrf.mxu0 }
 0xc27   :  { %v1061_v29 = vpop.f32.mrf.mxu1 }
 0xc28   :  { %v1062_v23 = vadd.f32 %v1061_v29, %v1041_v28 }
 0xc2a   :  { %v983_v24 = vpop.f32.mrf.mxu2 }
 0xc2b   :  { %v1003_v57 = vpop.f32.mrf.mxu3 }
 0xc2c   :  { %v1004_v30 = vadd.f32 %v1003_v57, %v983_v24  ;;  %v462_v43 = vpop.xlane.xlu0 %461 }
 0xc2d   :  { %v464_v38 = vsel %vm276_vm0, %v462_v43, 0.0 }
 0xc2e   :  { %1007 = vadd.xlane.f32.xlu0 %v1004_v30  ;;  %465 = vadd.xlane.f32.xlu1 %v464_v38 }
 0xc36   :  { %885 = vadd.xlane.f32.xlu1 %v882_v39  ;;  %v279_v31 = vpop.xlane.xlu0 %278 }
 0xc37   :  { %v280_v33 = vrot.slane %v279_v31, 4 }
 0xc39   :  { %v281_v35 = vadd.f32 %v280_v33, %v279_v31 }
 0xc3b   :  { %v282_v37 = vrot.slane %v281_v35, 2 }
 0xc3d   :  { %v283_v45 = vadd.f32 %v282_v37, %v281_v35 }
 0xc3e   :  { %1065 = vadd.xlane.f32.xlu1 %v1062_v23 }
 0xc3f   :  { %v284_v46 = vrot.slane %v283_v45, 1 }
 0xc41   :  { %v285_v50 = vadd.f32 %v284_v46, %v283_v45 }
 0xc43   :  { %1294 = vpush %v285_v50 }
 0xc44   :  { %v588_v51 = vpop.xlane.xlu2 %587 }
 0xc45   :  { %v589_v27 = vrot.slane %v588_v51, 4 }
 0xc47   :  { %v590_v2 = vadd.f32 %v589_v27, %v588_v51 }
 0xc49   :  { %v591_v10 = vrot.slane %v590_v2, 2 }
 0xc4b   :  { %v592_v63 = vadd.f32 %v591_v10, %v590_v2 }
 0xc4d   :  { %v593_v7 = vrot.slane %v592_v63, 1 }
 0xc4f   :  { %v594_v34 = vadd.f32 %v593_v7, %v592_v63 }
 0xc55   :  { %s2285_s0 = spop %1292 }
 0xc56   :  { %v1078_v2 = vstv %s2285_s0 }
 0xc74   :  { %s1295_s2 = spop %1294 }
 0xc75   :  { %v455_v31 = vstv %s1295_s2 }
 0xc76   :  { %v456_v33 = vsel %vm104_vm14, %v455_v31, 0.0 }
 0xc89   :  { %v826_v47 = vpop.xlane.xlu0 %825 }
 0xc8a   :  { %v827_v13 = vrot.slane %v826_v47, 4 }
 0xc8c   :  { %v828_v48 = vadd.f32 %v827_v13, %v826_v47 }
 0xc8e   :  { %v829_v58 = vrot.slane %v828_v48, 2 }
 0xc90   :  { %v830_v1 = vadd.f32 %v829_v58, %v828_v48 }
 0xc92   :  { %v831_v8 = vrot.slane %v830_v1, 1 }
 0xc94   :  { %v832_v41 = vadd.f32 %v831_v8, %v830_v1 }
 0xc95   :  { %v946_v49 = vpop.xlane.xlu2 %945 }
 0xc96   :  { %v947_v53 = vrot.slane %v946_v49, 4 }
 0xc98   :  { %v948_v62 = vadd.f32 %v947_v53, %v946_v49 }
 0xc9a   :  { %v949_v3 = vrot.slane %v948_v62, 2 }
 0xc9c   :  { %v950_v40 = vadd.f32 %v949_v3, %v948_v62 }
 0xc9e   :  { %v951_v20 = vrot.slane %v950_v40, 1 }
 0xca0   :  { %v952_v43 = vadd.f32 %v951_v20, %v950_v40 }
 0xca1   :  { %v1008_v55 = vpop.xlane.xlu0 %1007  ;;  %v466_v12 = vpop.xlane.xlu1 %465 }
 0xca2   :  { %v1009_v59 = vrot.slane %v1008_v55, 4  ;;  %v467_v60 = vrot.slane %v466_v12, 4 }
 0xca4   :  { %v468_v61 = vadd.f32 %v467_v60, %v466_v12  ;;  %v1010_v0 = vadd.f32 %v1009_v59, %v1008_v55  ;;  %v1079_v55 = vsel %vm1077_vm10, %v1078_v2, 0.0 }
 0xca6   :  { %v469_v52 = vrot.slane %v468_v61, 2  ;;  %v1011_v4 = vrot.slane %v1010_v0, 2 }
 0xca8   :  { %v470_v11 = vadd.f32 %v469_v52, %v468_v61  ;;  %v1012_v15 = vadd.f32 %v1011_v4, %v1010_v0 }
 0xca9   :  { %v886_v6 = vpop.xlane.xlu1 %885 }
 0xcaa   :  { %v887_v54 = vrot.slane %v886_v6, 4  ;;  %v471_v5 = vrot.slane %v470_v11, 1  ;;  %v1013_v24 = vrot.slane %v1012_v15, 1 }
 0xcac   :  { %v888_v9 = vadd.f32 %v887_v54, %v886_v6  ;;  %v472_v14 = vadd.f32 %v471_v5, %v470_v11  ;;  %v1014_v39 = vadd.f32 %v1013_v24, %v1012_v15 }
 0xcae   :  { %v889_v16 = vrot.slane %v888_v9, 2  ;;  %1296 = vpush %v472_v14 }
 0xcaf   :  { %1298 = vpush %v594_v34 }
 0xcb0   :  { %1300 = vpush %v832_v41  ;;  %v890_v32 = vadd.f32 %v889_v16, %v888_v9 }
 0xcb1   :  { %v1066_v19 = vpop.xlane.xlu1 %1065 }
 0xcb2   :  { %v1067_v21 = vrot.slane %v1066_v19, 4  ;;  %v891_v22 = vrot.slane %v890_v32, 1 }
 0xcb4   :  { %v1068_v57 = vadd.f32 %v1067_v21, %v1066_v19  ;;  %v892_v30 = vadd.f32 %v891_v22, %v890_v32 }
 0xcb6   :  { %v1069_v38 = vrot.slane %v1068_v57, 2  ;;  %1302 = vpush %v892_v30 }
 0xcb7   :  { %1304 = vpush %v952_v43 }
 0xcb8   :  { %v1070_v28 = vadd.f32 %v1069_v38, %v1068_v57  ;;  %1306 = vpush %v1014_v39 }
 0xcba   :  { %v1071_v29 = vrot.slane %v1070_v28, 1 }
 0xcbc   :  { %v1072_v23 = vadd.f32 %v1071_v29, %v1070_v28 }
 0xcbe   :  { %1308 = vpush %v1072_v23 }
 0xcdf   :  { %s1297_s28 = spop %1296 }
 0xce0   :  { %v474_v25 = vstv %s1297_s28  ;;  %s1299_s29 = spop %1298 }
 0xce1   :  { %v475_v56 = vsel %vm457_vm5, %v474_v25, 0.0  ;;  %s1301_s30 = spop %1300  ;;  %v816_v36 = vstv %s1299_s29 }
 0xce2   :  { %v476_v35 = vadd.f32 %v475_v56, %v456_v33  ;;  %v834_v37 = vstv %s1301_s30  ;;  %v817_v44 = vsel %vm104_vm14, %v816_v36, 0.0  ;;  %vm1019_vm14 = vcmp.eq.s32.totalorder %v1516_v42, 5 }
 0xce3   :  { %v835_v17 = vsel %vm457_vm5, %v834_v37, 0.0 }
 0xce4   :  { %479 = vst [vmem:[#allocation8] sm:$0xff] %v476_v35  ;;  %v836_v45 = vadd.f32 %v835_v17, %v817_v44 }
 0xce7   :  { %s1303_s4 = spop %1302 }
 0xce8   :  { %v894_v18 = vstv %s1303_s4  ;;  %s1305_s5 = spop %1304 }
 0xce9   :  { %v895_v46 = vsel %vm837_vm9, %v894_v18, 0.0  ;;  %v954_v26 = vstv %s1305_s5  ;;  %s1307_s6 = spop %1306 }
 0xcea   :  { %v896_v50 = vadd.f32 %v895_v46, %v836_v45  ;;  %v955_v51 = vsel %vm897_vm6, %v954_v26, 0.0  ;;  %v1016_v27 = vstv %s1307_s6 }
 0xceb   :  { %v1017_v13 = vsel %vm957_vm7, %v1016_v27, 0.0 }
 0xcec   :  { %v956_v47 = vadd.f32 %v955_v51, %v896_v50 }
 0xcee   :  { %v1018_v48 = vadd.f32 %v1017_v13, %v956_v47 }
 0xcef   :  { %s1309_s7 = spop %1308 }
 0xcf0   :  { %v1074_v49 = vstv %s1309_s7 }
 0xcf1   :  { %v1075_v10 = vsel %vm1019_vm14, %v1074_v49, 0.0 }
 0xcf2   :  { %v1076_v53 = vadd.f32 %v1075_v10, %v1018_v48 }
 0xcf4   :  { %v1080_v12 = vadd.f32 %v1079_v55, %v1076_v53 }
 0xcf6   :  { %1084 = vst [vmem:[#allocation8 + $0x8] sm:$0xff] %v1080_v12 }
 0xcf7   :  { %1097 = dma.vmem_to_hbm [thread:$0]  %s1090_s9, 256, %s1092_s12, [#allocation4], %s1461_s13, %s1461_s13, %s1462_s14  }
 0xcf8   :  { %1452 = dma.done.wait [#allocation4], 256  }
 0xcf9   :  { %1453 = vsyncadd [#allocation4], 4294967040 }
 0xcfa   :  { %1102 = vsyncpa [#allocation3], 1 }
 0xcfb   :  { %1103 = vsyncpa [#allocation6], 1 }
 0xcfc   :  { %1104 = vsyncpa [#allocation4], 1 }

</bundles_post_ra>
